<compile_context>
chip_gen: v6e
topology: v6e:2x2x1
jax: 0.10.0
libtpu: 0.0.40
codegen_flags: <defaults>
</compile_context>

<pallas_src>
import functools
import math

import jax
import jax.numpy as jnp
from jax import lax
from jax.experimental import pallas as pl
from jax.experimental.pallas import tpu as pltpu

EPS = 1e-5
_MIB = 1 << 20
_VMEM_BUDGET = 48 * _MIB          # v7x-safe working budget; v5e/v6e have 128 MiB VMEM

# dot_general dimension-number shorthands.
_DN_NT = (((1,), (1,)), ((), ()))   # x @ W.T   (contract minor dim of both)
_DN_NN = (((1,), (0,)), ((), ()))   # x @ W


def _rms(x, g):
    """RMSNorm with f32 statistics; rsqrt goes to the EUP."""
    return x * lax.rsqrt(jnp.mean(x * x, axis=-1, keepdims=True) + EPS) * g


def _bspec(block_shape, index_map, *, buffers=None):
    """BlockSpec helper.

    Grid-invariant operands (constant index_map) get buffers=1 so Pallas does not burn
    VMEM double-buffering blocks that never change.  Falls back to the default spec if
    this jax version has no pipeline_mode kwarg."""
    if buffers is not None:
        try:
            return pl.BlockSpec(block_shape, index_map,
                                pipeline_mode=pl.Buffered(buffers))
        except Exception:
            pass
    return pl.BlockSpec(block_shape, index_map)


# ----------------------------------------------------------------------------
# Tile-size / VMEM-budget helpers
# ----------------------------------------------------------------------------
def _pick_tile(total, target, align):
    """Largest multiple of `align` dividing `total` that is <= target, else `total`."""
    if total <= target:
        return total
    t = (target // align) * align
    while t >= align:
        if total % t == 0:
            return t
        t -= align
    return total


def _derive_ff_tile(S, D, d_ff):
    bf, f4 = 2, 4
    fixed = (4 * D * D * bf                    # resident Wq/Wk/Wv/Wo (single-buffered)
             + 2 * S * (D // 2) * f4           # cos/sin tables
             + 2 * S * D * f4 * 2              # x / out blocks (double-buffered)
             + 3 * S * D * f4 + S * D * bf     # q/k/attn/yn scratch
             + 8 * S * D * f4 + 3 * S * S * f4)  # in-kernel temporaries (rough)
    per_ft = 2 * 3 * D * bf + 2 * S * f4       # streamed w1/w2/w3 (x2 bufs) + a/g slabs
    avail = max(_VMEM_BUDGET - fixed, per_ft * 128)
    target = max(128, min(2048, (avail // per_ft) // 128 * 128))
    return _pick_tile(d_ff, target, 128)


def _derive_vocab_tile(S, D, V):
    bf, f4 = 2, 4
    fixed = 2 * S * D * bf                     # bf16 activation block (x2 buffers)
    per_vt = 2 * D * bf + 2 * S * f4           # weight tile (x2) + f32 logits tile (x2)
    avail = max(_VMEM_BUDGET - fixed, per_vt * 128)
    target = max(128, min(4096, (avail // per_vt) // 128 * 128))
    return _pick_tile(V, target, 128)


def _vmem_limit(estimate_bytes):
    # Floor at 32 MiB (>= default scoped limit), cap at 64 MiB (valid on every gen).
    return int(min(max(estimate_bytes, 32 * _MIB), 64 * _MIB))


def _block_vmem_bytes(S, D, ft):
    bf, f4 = 2, 4
    return (4 * D * D * bf + 2 * S * (D // 2) * f4 + 2 * D * f4
            + 2 * 3 * ft * D * bf + 2 * S * ft * f4
            + 2 * S * D * f4 * 2
            + 3 * S * D * f4 + S * D * bf
            + 8 * S * D * f4 + 3 * S * S * f4)


def _head_vmem_bytes(S, D, vt):
    bf, f4 = 2, 4
    return 2 * S * D * bf + 2 * vt * D * bf + 3 * S * vt * f4


# ----------------------------------------------------------------------------
# Pallas kernels
# ----------------------------------------------------------------------------
def _block_kernel(x_ref, wq_ref, wk_ref, wv_ref, wo_ref, ln1_ref,
                  w1_ref, w2_ref, w3_ref, ln2_ref, cos_ref, sin_ref,
                  o_ref, q_sc, k_sc, attn_sc, yn_sc, *, num_heads):
    f = pl.program_id(1)
    bf16 = jnp.bfloat16

    # ---- attention + residual + RMSNorm2: only once per batch row (ff tile 0) ----
    @pl.when(f == 0)
    def _attention():
        x = x_ref[...]                                   # (S, D) f32
        S, D = x.shape
        H = num_heads
        dk = D // H
        hd = dk // 2
        Dh = D // 2

        xn = _rms(x, ln1_ref[...]).astype(bf16)

        # Full-width projections: contraction K = D keeps the MXU well fed.  Wq rows
        # already carry the 1/sqrt(dk) scale; Wq/Wk rows are permuted to the
        # [all even-pair feats | all odd-pair feats] rotate-half layout.
        q = lax.dot_general(xn, wq_ref[...], _DN_NT, preferred_element_type=jnp.float32)
        k = lax.dot_general(xn, wk_ref[...], _DN_NT, preferred_element_type=jnp.float32)
        v = lax.dot_general(xn, wv_ref[...], _DN_NT, preferred_element_type=jnp.float32)

        # RoPE in rotate-half form: two contiguous half slices + pure VPU math
        # (no swap matmul, no cross-lane shuffles).
        cos = cos_ref[...]                               # (S, D/2)
        sin = sin_ref[...]
        qe, qo = q[:, :Dh], q[:, Dh:]
        ke, ko = k[:, :Dh], k[:, Dh:]
        qre = qe * cos - qo * sin
        qro = qe * sin + qo * cos
        kre = ke * cos - ko * sin
        kro = ke * sin + ko * cos

        # One lane-copy pass into head-contiguous scratch so every head's rotated
        # feature set is adjacent: a single K=dk score matmul per head below.
        for h in range(H):
            hs = slice(h * hd, (h + 1) * hd)
            base = h * dk
            q_sc[:, base:base + hd] = qre[:, hs]
            q_sc[:, base + hd:base + dk] = qro[:, hs]
            k_sc[:, base:base + hd] = kre[:, hs]
            k_sc[:, base + hd:base + dk] = kro[:, hs]

        q_rot = q_sc[...].astype(bf16)                   # (S, D) head-contiguous
        k_rot = k_sc[...].astype(bf16)
        v = v.astype(bf16)

        # Additive causal bias, hoisted out of the head loop.  -1e30 stays f32.
        row = lax.broadcasted_iota(jnp.int32, (S, S), 0)
        col = lax.broadcasted_iota(jnp.int32, (S, S), 1)
        bias = jnp.where(col <= row, 0.0, -1e30).astype(jnp.float32)

        for h in range(H):
            sl = slice(h * dk, (h + 1) * dk)
            s = lax.dot_general(q_rot[:, sl], k_rot[:, sl], _DN_NT,
                                preferred_element_type=jnp.float32)   # one K=dk matmul
            s = s + bias
            s = s - jnp.max(s, axis=-1, keepdims=True)
            e = jnp.exp(s)
            # approx reciprocal (EUP): ~1e-3 relative error in probabilities; fine for
            # the validation tolerance here, swap approx=False for production exactness.
            p = (e * pl.reciprocal(jnp.sum(e, axis=-1, keepdims=True), approx=True)
                 ).astype(bf16)
            attn_sc[:, sl] = lax.dot_general(p, v[:, sl], _DN_NN,
                                             preferred_element_type=jnp.float32)

        # Single fused (S, D) @ (D, D) output projection against the original Wo.
        attn = lax.dot_general(attn_sc[...].astype(bf16), wo_ref[...], _DN_NT,
                               preferred_element_type=jnp.float32)
        y = x + attn
        o_ref[...] = y                                    # residual; FFN added below
        yn_sc[...] = _rms(y, ln2_ref[...]).astype(bf16)   # reused by every d_ff tile

    # ---- SwiGLU FFN, one d_ff slab per grid step (accumulated into o_ref) ----
    yn = yn_sc[...]                                       # (S, D) bf16
    a = lax.dot_general(yn, w1_ref[...], _DN_NT, preferred_element_type=jnp.float32)
    g = lax.dot_general(yn, w3_ref[...], _DN_NT, preferred_element_type=jnp.float32)
    hact = (a * jax.nn.sigmoid(a) * g).astype(jnp.bfloat16)          # (S, ff_tile)
    o_ref[...] += lax.dot_general(hact, w2_ref[...], _DN_NT,
                                  preferred_element_type=jnp.float32)


def _final_norm_kernel(x_ref, g_ref, o_ref):
    o_ref[...] = _rms(x_ref[...], g_ref[...]).astype(jnp.bfloat16)


def _head_kernel(xn_ref, w_ref, o_ref):
    # xn is already final-RMSNorm'ed bf16; just the vocab-tile projection.
    o_ref[...] = lax.dot_general(xn_ref[...], w_ref[...], _DN_NT,
                                 preferred_element_type=jnp.float32)


# ----------------------------------------------------------------------------
# Wrappers (pallas_call plumbing)
# ----------------------------------------------------------------------------
def transformer_block(x, lp, cos_t, sin_t, num_heads):
    B, S, D = x.shape
    d_ff = lp["w1"].shape[0]
    ft = _derive_ff_tile(S, D, d_ff)          # stream FFN weights in d_ff slabs
    nf = d_ff // ft
    kernel = functools.partial(_block_kernel, num_heads=num_heads)
    vlim = _vmem_limit(int(_block_vmem_bytes(S, D, ft) * 1.5))

    return pl.pallas_call(
        kernel,
        out_shape=jax.ShapeDtypeStruct((B, S, D), jnp.float32),
        grid_spec=pltpu.PrefetchScalarGridSpec(
            num_scalar_prefetch=0,
            grid=(B, nf),
            in_specs=[
                pl.BlockSpec((None, S, D), lambda b, f: (b, 0, 0)),      # x (batch squeezed)
                _bspec((D, D), lambda b, f: (0, 0), buffers=1),          # wq (perm+scaled)
                _bspec((D, D), lambda b, f: (0, 0), buffers=1),          # wk (perm)
                _bspec((D, D), lambda b, f: (0, 0), buffers=1),          # wv
                _bspec((D, D), lambda b, f: (0, 0), buffers=1),          # wo
                _bspec((1, D), lambda b, f: (0, 0), buffers=1),          # ln1
                pl.BlockSpec((ft, D), lambda b, f: (f, 0)),              # w1 tile
                pl.BlockSpec((D, ft), lambda b, f: (0, f)),              # w2 tile
                pl.BlockSpec((ft, D), lambda b, f: (f, 0)),              # w3 tile
                _bspec((1, D), lambda b, f: (0, 0), buffers=1),          # ln2
                _bspec((S, D // 2), lambda b, f: (0, 0), buffers=1),     # cos table
                _bspec((S, D // 2), lambda b, f: (0, 0), buffers=1),     # sin table
            ],
            out_specs=pl.BlockSpec((None, S, D), lambda b, f: (b, 0, 0)),
            scratch_shapes=[pltpu.VMEM((S, D), jnp.float32),     # rotated q (head-contig)
                            pltpu.VMEM((S, D), jnp.float32),     # rotated k (head-contig)
                            pltpu.VMEM((S, D), jnp.float32),     # per-head attn outputs
                            pltpu.VMEM((S, D), jnp.bfloat16)],   # cached RMSNorm2(y)
        ),
        compiler_params=pltpu.CompilerParams(
            dimension_semantics=("parallel", "arbitrary"),
            vmem_limit_bytes=vlim),
    )(x, lp["wq"], lp["wk"], lp["wv"], lp["wo"], lp["ln1"],
      lp["w1"], lp["w2"], lp["w3"], lp["ln2"], cos_t, sin_t)


def final_norm(x, lnf):
    B, S, D = x.shape
    return pl.pallas_call(
        _final_norm_kernel,
        out_shape=jax.ShapeDtypeStruct((B, S, D), jnp.bfloat16),
        grid_spec=pltpu.PrefetchScalarGridSpec(
            num_scalar_prefetch=0,
            grid=(B,),
            in_specs=[pl.BlockSpec((None, S, D), lambda b: (b, 0, 0)),
                      _bspec((1, D), lambda b: (0, 0), buffers=1)],
            out_specs=pl.BlockSpec((None, S, D), lambda b: (b, 0, 0)),
        ),
        compiler_params=pltpu.CompilerParams(dimension_semantics=("parallel",)),
    )(x, lnf)


def lm_head(xn_bf16, w_bf16):
    B, S, D = xn_bf16.shape
    V = w_bf16.shape[0]
    vt = _derive_vocab_tile(S, D, V)          # vocab tile from the VMEM budget
    nv = V // vt
    vlim = _vmem_limit(int(_head_vmem_bytes(S, D, vt) * 1.5))
    return pl.pallas_call(
        _head_kernel,
        out_shape=jax.ShapeDtypeStruct((B, S, V), jnp.float32),
        grid_spec=pltpu.PrefetchScalarGridSpec(
            num_scalar_prefetch=0,
            grid=(B, nv),
            in_specs=[
                pl.BlockSpec((None, S, D), lambda b, v: (b, 0, 0)),      # bf16 activations
                pl.BlockSpec((vt, D), lambda b, v: (v, 0)),              # vocab weight tile
            ],
            out_specs=pl.BlockSpec((None, S, vt), lambda b, v: (b, 0, v)),
        ),
        compiler_params=pltpu.CompilerParams(
            dimension_semantics=("parallel", "parallel"),
            vmem_limit_bytes=vlim),
    )(xn_bf16, w_bf16)


# ----------------------------------------------------------------------------
# RoPE tables / parameter preparation (hoisted, runs once) / init / forward
# ----------------------------------------------------------------------------
def rope_tables(S, d_model, num_heads, theta):
    dk = d_model // num_heads
    pos = jnp.arange(S, dtype=jnp.float32)[:, None]                       # (S, 1)
    inv = theta ** (-(jnp.arange(0, dk, 2, dtype=jnp.float32)) / dk)      # (dk/2,)
    ang = pos * inv[None, :]                                              # (S, dk/2)
    cos_t = jnp.tile(jnp.cos(ang), (1, num_heads))                        # (S, D/2)
    sin_t = jnp.tile(jnp.sin(ang), (1, num_heads))
    return cos_t, sin_t


def _prep_layer(lp, num_heads):
    """Permute Wq/Wk rows to rotate-half order, fold 1/sqrt(dk) into Wq, cast bf16."""
    D = lp["wq"].shape[0]
    H = num_heads
    dk = D // H
    hd = dk // 2
    bf = jnp.bfloat16
    even = (jnp.arange(H)[:, None] * dk + 2 * jnp.arange(hd)[None, :]).reshape(-1)
    perm = jnp.concatenate([even, even + 1])     # [even pair feats | odd pair feats]
    scale = 1.0 / math.sqrt(dk)
    return dict(
        wq=(lp["wq"][perm] * scale).astype(bf),
        wk=lp["wk"][perm].astype(bf),
        wv=lp["wv"].astype(bf),
        wo=lp["wo"].astype(bf),
        w1=lp["w1"].astype(bf),
        w2=lp["w2"].astype(bf),
        w3=lp["w3"].astype(bf),
        ln1=lp["ln1"],
        ln2=lp["ln2"],
    )


def prepare_params(params, num_heads):
    """One-time parameter prep (outside the per-call forward): permutations + bf16."""
    return dict(
        tok_emb=params["tok_emb"],
        layers=[_prep_layer(lp, num_heads) for lp in params["layers"]],
        ln_final=params["ln_final"],
        lm_head=params["lm_head"].astype(jnp.bfloat16),
    )


def init_params(key, vocab, d_model, num_layers, num_heads, d_ff):
    keys = jax.random.split(key, 2 + num_layers)

    def nrm(k, shape, scale):
        return scale * jax.random.normal(k, shape, dtype=jnp.float32)

    params = {"tok_emb": nrm(keys[0], (vocab, d_model), 0.02)}
    layers = []
    for li in range(num_layers):
        ks = jax.random.split(keys[2 + li], 9)
        layers.append(dict(
            wq=nrm(ks[0], (d_model, d_model), 0.05),
            wk=nrm(ks[1], (d_model, d_model), 0.05),
            wv=nrm(ks[2], (d_model, d_model), 0.05),
            wo=nrm(ks[3], (d_model, d_model), 0.05),
            ln1=jnp.ones((1, d_model), jnp.float32) + nrm(ks[4], (1, d_model), 0.01),
            w1=nrm(ks[5], (d_ff, d_model), 0.05),
            w2=nrm(ks[6], (d_model, d_ff), 0.05),
            w3=nrm(ks[7], (d_ff, d_model), 0.05),
            ln2=jnp.ones((1, d_model), jnp.float32) + nrm(ks[8], (1, d_model), 0.01),
        ))
    params["layers"] = layers
    params["ln_final"] = jnp.ones((1, d_model), jnp.float32)
    params["lm_head"] = nrm(keys[1], (vocab, d_model), 0.05)
    return params


def transformer_lm_forward(token_ids, prepped, *, num_heads, theta):
    d_model = prepped["tok_emb"].shape[1]
    S = token_ids.shape[1]
    x = jnp.take(prepped["tok_emb"], token_ids, axis=0)     # embedding gather (glue)
    cos_t, sin_t = rope_tables(S, d_model, num_heads, theta)
    for lp in prepped["layers"]:
        x = transformer_block(x, lp, cos_t, sin_t, num_heads)
    xn = final_norm(x, prepped["ln_final"])                  # bf16 normalized acts
    return lm_head(xn, prepped["lm_head"])


# ----------------------------------------------------------------------------
# Pure-JAX f32 reference (original interleaved-RoPE semantics) for the check
# ----------------------------------------------------------------------------
def ref_forward(token_ids, params, num_heads, theta):
    x = params["tok_emb"][token_ids]
    B, S, D = x.shape
    dk = D // num_heads

    def rms(t, g):
        return t / jnp.sqrt(jnp.mean(t * t, axis=-1, keepdims=True) + EPS) * g

    pos = jnp.arange(S, dtype=jnp.float32)[:, None]
    inv = theta ** (-(jnp.arange(0, dk, 2, dtype=jnp.float32)) / dk)
    ang = pos * inv[None, :]
    c, s = jnp.cos(ang), jnp.sin(ang)                       # (S, dk/2)

    def rope_ref(t):                                        # t: (B, S, H, dk)
        te, to = t[..., 0::2], t[..., 1::2]
        re = te * c[None, :, None, :] - to * s[None, :, None, :]
        ro = te * s[None, :, None, :] + to * c[None, :, None, :]
        return jnp.stack([re, ro], axis=-1).reshape(t.shape)

    for lp in params["layers"]:
        xn = rms(x, lp["ln1"][0])
        q = (xn @ lp["wq"].T).reshape(B, S, num_heads, dk)
        k = (xn @ lp["wk"].T).reshape(B, S, num_heads, dk)
        v = (xn @ lp["wv"].T).reshape(B, S, num_heads, dk)
        q, k = rope_ref(q), rope_ref(k)
        att = jnp.einsum("bqhd,bkhd->bhqk", q, k) / math.sqrt(dk)
        mask = jnp.tril(jnp.ones((S, S), bool))
        att = jnp.where(mask, att, -jnp.inf)
        p = jax.nn.softmax(att, axis=-1)
        o = jnp.einsum("bhqk,bkhd->bqhd", p, v).reshape(B, S, D)
        x = x + o @ lp["wo"].T
        yn = rms(x, lp["ln2"][0])
        a, b = yn @ lp["w1"].T, yn @ lp["w3"].T
        x = x + (a * jax.nn.sigmoid(a) * b) @ lp["w2"].T
    x = rms(x, params["ln_final"][0])
    return x @ params["lm_head"].T


# ----------------------------------------------------------------------------
if __name__ == "__main__":
    vocab_size = 64
    context_length = 16
    d_model = 32
    num_layers = 2
    num_heads = 4
    d_ff = 64
    rope_theta = 10000.0
    B, S = 2, 8                      # seq <= context_length

    key = jax.random.PRNGKey(0)
    pkey, tkey = jax.random.split(key)
    params = init_params(pkey, vocab_size, d_model, num_layers, num_heads, d_ff)
    tokens = jax.random.randint(tkey, (B, S), 0, vocab_size, dtype=jnp.int32)

    # One-time parameter preparation, hoisted out of the jitted per-call forward.
    prepped = prepare_params(params, num_heads)

    fwd = jax.jit(functools.partial(transformer_lm_forward,
                                    num_heads=num_heads, theta=rope_theta))
    out = fwd(tokens, prepped)
    out = jax.block_until_ready(out)

    ref = ref_forward(tokens, params, num_heads, rope_theta)
    assert out.shape == (B, S, vocab_size), out.shape
    max_err = float(jnp.max(jnp.abs(out - ref)))
    # bf16 matmul operands (f32 accumulation) vs. the pure-f32 reference.
    assert jnp.allclose(out, ref, atol=3e-2, rtol=3e-2), f"max_err={max_err}"

    print("KERNEL_OK")
</pallas_src>

<mosaic_0001>
module attributes {stable_mosaic.version = 11 : i64} {
  func.func @_final_norm_kernel(%arg0: i32, %arg1: memref<1x8x32xf32, #tpu.memory_space<vmem>>, %arg2: memref<1x32xf32, #tpu.memory_space<vmem>>, %arg3: memref<1x8x32xbf16, #tpu.memory_space<vmem>>) attributes {dimension_semantics = [#tpu.dimension_semantics<parallel>], iteration_bounds = array<i64: 2>, scalar_prefetch = 0 : i64, scratch_operands = 0 : i64, tpu.core_type = #tpu.core_type<tc>, window_params = [{transform_indices = @transform_0, window_bounds = array<i64: 1, 8, 32>}, {pipeline_mode = #tpu.pipeline_mode<synchronous>, transform_indices = @transform_1, window_bounds = array<i64: 1, 32>}, {transform_indices = @transform_2, window_bounds = array<i64: 1, 8, 32>}]} {
    %c0 = arith.constant 0 : index
    %c0_0 = arith.constant 0 : index
    %c0_1 = arith.constant 0 : index
    %0 = vector.load %arg1[%c0, %c0_0, %c0_1] : memref<1x8x32xf32, #tpu.memory_space<vmem>>, vector<1x8x32xf32>
    %1 = vector.shape_cast %0 : vector<1x8x32xf32> to vector<8x32xf32>
    %c0_2 = arith.constant 0 : index
    %c0_3 = arith.constant 0 : index
    %2 = vector.load %arg2[%c0_2, %c0_3] : memref<1x32xf32, #tpu.memory_space<vmem>>, vector<1x32xf32>
    %3 = arith.mulf %1, %1 : vector<8x32xf32>
    %cst = arith.constant dense<0.000000e+00> : vector<8xf32>
    %4 = vector.multi_reduction <add>, %3, %cst [1] : vector<8x32xf32> to vector<8xf32>
    %5 = vector.shape_cast %4 : vector<8xf32> to vector<8x1xf32>
    %cst_4 = arith.constant 3.200000e+01 : f32
    %6 = vector.broadcast %cst_4 : f32 to vector<8x1xf32>
    %7 = arith.divf %5, %6 : vector<8x1xf32>
    %cst_5 = arith.constant 9.99999974E-6 : f32
    %8 = vector.broadcast %cst_5 : f32 to vector<8x1xf32>
    %9 = arith.addf %7, %8 : vector<8x1xf32>
    %10 = math.rsqrt %9 : vector<8x1xf32>
    %11 = vector.broadcast %10 : vector<8x1xf32> to vector<8x32xf32>
    %12 = arith.mulf %1, %11 : vector<8x32xf32>
    %13 = vector.broadcast %2 : vector<1x32xf32> to vector<8x32xf32>
    %14 = arith.mulf %12, %13 : vector<8x32xf32>
    %15 = arith.truncf %14 : vector<8x32xf32> to vector<8x32xbf16>
    %c0_6 = arith.constant 0 : index
    %c0_7 = arith.constant 0 : index
    %c0_8 = arith.constant 0 : index
    %16 = vector.load %arg3[%c0_6, %c0_7, %c0_8] : memref<1x8x32xbf16, #tpu.memory_space<vmem>>, vector<1x8x32xbf16>
    %17 = vector.shape_cast %16 : vector<1x8x32xbf16> to vector<8x32xbf16>
    %18 = vector.shape_cast %15 : vector<8x32xbf16> to vector<1x8x32xbf16>
    tpu.vector_store %arg3[%c0_6, %c0_7, %c0_8], %18 {strides = array<i32>} : memref<1x8x32xbf16, #tpu.memory_space<vmem>>, vector<1x8x32xbf16>,
    return
  }
  func.func @transform_0(%arg0: i32) -> (i32, i32, i32) {
    %c0_i32 = arith.constant 0 : i32
    %c0_i32_0 = arith.constant 0 : i32
    %c0_i32_1 = arith.constant 0 : i32
    return %arg0, %c0_i32, %c0_i32_0 : i32, i32, i32
  }
  func.func @transform_1(%arg0: i32) -> (i32, i32) {
    %c0_i32 = arith.constant 0 : i32
    %c0_i32_0 = arith.constant 0 : i32
    %c0_i32_1 = arith.constant 0 : i32
    return %c0_i32, %c0_i32_0 : i32, i32
  }
  func.func @transform_2(%arg0: i32) -> (i32, i32, i32) {
    %c0_i32 = arith.constant 0 : i32
    %c0_i32_0 = arith.constant 0 : i32
    %c0_i32_1 = arith.constant 0 : i32
    return %arg0, %c0_i32, %c0_i32_0 : i32, i32, i32
  }
}

module attributes {stable_mosaic.version = 11 : i64} {
  func.func @_head_kernel(%arg0: i32, %arg1: i32, %arg2: memref<1x8x32xbf16, #tpu.memory_space<vmem>>, %arg3: memref<64x32xbf16, #tpu.memory_space<vmem>>, %arg4: memref<1x8x64xf32, #tpu.memory_space<vmem>>) attributes {dimension_semantics = [#tpu.dimension_semantics<parallel>, #tpu.dimension_semantics<parallel>], iteration_bounds = array<i64: 2, 1>, scalar_prefetch = 0 : i64, scratch_operands = 0 : i64, tpu.core_type = #tpu.core_type<tc>, window_params = [{transform_indices = @transform_0, window_bounds = array<i64: 1, 8, 32>}, {transform_indices = @transform_1, window_bounds = array<i64: 64, 32>}, {transform_indices = @transform_2, window_bounds = array<i64: 1, 8, 64>}]} {
    %c0 = arith.constant 0 : index
    %c0_0 = arith.constant 0 : index
    %c0_1 = arith.constant 0 : index
    %0 = vector.load %arg2[%c0, %c0_0, %c0_1] : memref<1x8x32xbf16, #tpu.memory_space<vmem>>, vector<1x8x32xbf16>
    %1 = vector.shape_cast %0 : vector<1x8x32xbf16> to vector<8x32xbf16>
    %c0_2 = arith.constant 0 : index
    %c0_3 = arith.constant 0 : index
    %2 = vector.load %arg3[%c0_2, %c0_3] : memref<64x32xbf16, #tpu.memory_space<vmem>>, vector<64x32xbf16>
    %cst = arith.constant dense<0.000000e+00> : vector<8x64xf32>
    %3 = tpu.matmul %1, %2, %cst {dimension_numbers = #tpu.dot_dimension_numbers<[1], [1], [0], [0], [0, 0, 1, 0], [], []>} : vector<8x32xbf16>, vector<64x32xbf16>, vector<8x64xf32> -> vector<8x64xf32>
    %c0_4 = arith.constant 0 : index
    %c0_5 = arith.constant 0 : index
    %c0_6 = arith.constant 0 : index
    %4 = vector.load %arg4[%c0_4, %c0_5, %c0_6] : memref<1x8x64xf32, #tpu.memory_space<vmem>>, vector<1x8x64xf32>
    %5 = vector.shape_cast %4 : vector<1x8x64xf32> to vector<8x64xf32>
    %6 = vector.shape_cast %3 : vector<8x64xf32> to vector<1x8x64xf32>
    tpu.vector_store %arg4[%c0_4, %c0_5, %c0_6], %6 {strides = array<i32>} : memref<1x8x64xf32, #tpu.memory_space<vmem>>, vector<1x8x64xf32>,
    return
  }
  func.func @transform_0(%arg0: i32, %arg1: i32) -> (i32, i32, i32) {
    %c0_i32 = arith.constant 0 : i32
    %c0_i32_0 = arith.constant 0 : i32
    %c0_i32_1 = arith.constant 0 : i32
    return %arg0, %c0_i32, %c0_i32_0 : i32, i32, i32
  }
  func.func @transform_1(%arg0: i32, %arg1: i32) -> (i32, i32) {
    %c0_i32 = arith.constant 0 : i32
    %c0_i32_0 = arith.constant 0 : i32
    return %arg1, %c0_i32 : i32, i32
  }
  func.func @transform_2(%arg0: i32, %arg1: i32) -> (i32, i32, i32) {
    %c0_i32 = arith.constant 0 : i32
    %c0_i32_0 = arith.constant 0 : i32
    return %arg0, %c0_i32, %arg1 : i32, i32, i32
  }
}

module attributes {stable_mosaic.version = 11 : i64} {
  func.func @_block_kernel(%arg0: i32, %arg1: i32, %arg2: memref<1x8x32xf32, #tpu.memory_space<vmem>>, %arg3: memref<32x32xbf16, #tpu.memory_space<vmem>>, %arg4: memref<32x32xbf16, #tpu.memory_space<vmem>>, %arg5: memref<32x32xbf16, #tpu.memory_space<vmem>>, %arg6: memref<32x32xbf16, #tpu.memory_space<vmem>>, %arg7: memref<1x32xf32, #tpu.memory_space<vmem>>, %arg8: memref<64x32xbf16, #tpu.memory_space<vmem>>, %arg9: memref<32x64xbf16, #tpu.memory_space<vmem>>, %arg10: memref<64x32xbf16, #tpu.memory_space<vmem>>, %arg11: memref<1x32xf32, #tpu.memory_space<vmem>>, %arg12: memref<8x16xf32, #tpu.memory_space<vmem>>, %arg13: memref<8x16xf32, #tpu.memory_space<vmem>>, %arg14: memref<1x8x32xf32, #tpu.memory_space<vmem>>, %arg15: memref<8x32xf32, #tpu.memory_space<vmem>>, %arg16: memref<8x32xf32, #tpu.memory_space<vmem>>, %arg17: memref<8x32xf32, #tpu.memory_space<vmem>>, %arg18: memref<8x32xbf16, #tpu.memory_space<vmem>>) attributes {dimension_semantics = [#tpu.dimension_semantics<parallel>, #tpu.dimension_semantics<arbitrary>], iteration_bounds = array<i64: 2, 1>, scalar_prefetch = 0 : i64, scratch_operands = 4 : i64, tpu.core_type = #tpu.core_type<tc>, window_params = [{transform_indices = @transform_0, window_bounds = array<i64: 1, 8, 32>}, {pipeline_mode = #tpu.pipeline_mode<synchronous>, transform_indices = @transform_1, window_bounds = array<i64: 32, 32>}, {pipeline_mode = #tpu.pipeline_mode<synchronous>, transform_indices = @transform_2, window_bounds = array<i64: 32, 32>}, {pipeline_mode = #tpu.pipeline_mode<synchronous>, transform_indices = @transform_3, window_bounds = array<i64: 32, 32>}, {pipeline_mode = #tpu.pipeline_mode<synchronous>, transform_indices = @transform_4, window_bounds = array<i64: 32, 32>}, {pipeline_mode = #tpu.pipeline_mode<synchronous>, transform_indices = @transform_5, window_bounds = array<i64: 1, 32>}, {transform_indices = @transform_6, window_bounds = array<i64: 64, 32>}, {transform_indices = @transform_7, window_bounds = array<i64: 32, 64>}, {transform_indices = @transform_8, window_bounds = array<i64: 64, 32>}, {pipeline_mode = #tpu.pipeline_mode<synchronous>, transform_indices = @transform_9, window_bounds = array<i64: 1, 32>}, {pipeline_mode = #tpu.pipeline_mode<synchronous>, transform_indices = @transform_10, window_bounds = array<i64: 8, 16>}, {pipeline_mode = #tpu.pipeline_mode<synchronous>, transform_indices = @transform_11, window_bounds = array<i64: 8, 16>}, {transform_indices = @transform_12, window_bounds = array<i64: 1, 8, 32>}]} {
    %c0_i32 = arith.constant 0 : i32
    %0 = arith.cmpi eq, %arg1, %c0_i32 : i32
    %1 = arith.extui %0 : i1 to i32
    %c0_i32_0 = arith.constant 0 : i32
    %2 = arith.cmpi ne, %1, %c0_i32_0 : i32
    scf.if %2 {
      %c0_17 = arith.constant 0 : index
      %c0_18 = arith.constant 0 : index
      %c0_19 = arith.constant 0 : index
      %24 = vector.load %arg2[%c0_17, %c0_18, %c0_19] : memref<1x8x32xf32, #tpu.memory_space<vmem>>, vector<1x8x32xf32>
      %25 = vector.shape_cast %24 : vector<1x8x32xf32> to vector<8x32xf32>
      %c0_20 = arith.constant 0 : index
      %c0_21 = arith.constant 0 : index
      %26 = vector.load %arg7[%c0_20, %c0_21] : memref<1x32xf32, #tpu.memory_space<vmem>>, vector<1x32xf32>
      %27 = arith.mulf %25, %25 : vector<8x32xf32>
      %cst_22 = arith.constant dense<0.000000e+00> : vector<8xf32>
      %28 = vector.multi_reduction <add>, %27, %cst_22 [1] : vector<8x32xf32> to vector<8xf32>
      %29 = vector.shape_cast %28 : vector<8xf32> to vector<8x1xf32>
      %cst_23 = arith.constant 3.200000e+01 : f32
      %30 = vector.broadcast %cst_23 : f32 to vector<8x1xf32>
      %31 = arith.divf %29, %30 : vector<8x1xf32>
      %cst_24 = arith.constant 9.99999974E-6 : f32
      %32 = vector.broadcast %cst_24 : f32 to vector<8x1xf32>
      %33 = arith.addf %31, %32 : vector<8x1xf32>
      %34 = math.rsqrt %33 : vector<8x1xf32>
      %35 = vector.broadcast %34 : vector<8x1xf32> to vector<8x32xf32>
      %36 = arith.mulf %25, %35 : vector<8x32xf32>
      %37 = vector.broadcast %26 : vector<1x32xf32> to vector<8x32xf32>
      %38 = arith.mulf %36, %37 : vector<8x32xf32>
      %39 = arith.truncf %38 : vector<8x32xf32> to vector<8x32xbf16>
      %c0_25 = arith.constant 0 : index
      %c0_26 = arith.constant 0 : index
      %40 = vector.load %arg3[%c0_25, %c0_26] : memref<32x32xbf16, #tpu.memory_space<vmem>>, vector<32x32xbf16>
      %cst_27 = arith.constant dense<0.000000e+00> : vector<8x32xf32>
      %41 = tpu.matmul %39, %40, %cst_27 {dimension_numbers = #tpu.dot_dimension_numbers<[1], [1], [0], [0], [0, 0, 1, 0], [], []>} : vector<8x32xbf16>, vector<32x32xbf16>, vector<8x32xf32> -> vector<8x32xf32>
      %c0_28 = arith.constant 0 : index
      %c0_29 = arith.constant 0 : index
      %42 = vector.load %arg4[%c0_28, %c0_29] : memref<32x32xbf16, #tpu.memory_space<vmem>>, vector<32x32xbf16>
      %cst_30 = arith.constant dense<0.000000e+00> : vector<8x32xf32>
      %43 = tpu.matmul %39, %42, %cst_30 {dimension_numbers = #tpu.dot_dimension_numbers<[1], [1], [0], [0], [0, 0, 1, 0], [], []>} : vector<8x32xbf16>, vector<32x32xbf16>, vector<8x32xf32> -> vector<8x32xf32>
      %c0_31 = arith.constant 0 : index
      %c0_32 = arith.constant 0 : index
      %44 = vector.load %arg5[%c0_31, %c0_32] : memref<32x32xbf16, #tpu.memory_space<vmem>>, vector<32x32xbf16>
      %cst_33 = arith.constant dense<0.000000e+00> : vector<8x32xf32>
      %45 = tpu.matmul %39, %44, %cst_33 {dimension_numbers = #tpu.dot_dimension_numbers<[1], [1], [0], [0], [0, 0, 1, 0], [], []>} : vector<8x32xbf16>, vector<32x32xbf16>, vector<8x32xf32> -> vector<8x32xf32>
      %c0_34 = arith.constant 0 : index
      %c0_35 = arith.constant 0 : index
      %46 = vector.load %arg12[%c0_34, %c0_35] : memref<8x16xf32, #tpu.memory_space<vmem>>, vector<8x16xf32>
      %c0_36 = arith.constant 0 : index
      %c0_37 = arith.constant 0 : index
      %47 = vector.load %arg13[%c0_36, %c0_37] : memref<8x16xf32, #tpu.memory_space<vmem>>, vector<8x16xf32>
      %48 = vector.extract_strided_slice %41 {offsets = [0, 0], sizes = [8, 16], strides = [1, 1]} : vector<8x32xf32> to vector<8x16xf32>
      %49 = vector.extract_strided_slice %41 {offsets = [0, 16], sizes = [8, 16], strides = [1, 1]} : vector<8x32xf32> to vector<8x16xf32>
      %50 = vector.extract_strided_slice %43 {offsets = [0, 0], sizes = [8, 16], strides = [1, 1]} : vector<8x32xf32> to vector<8x16xf32>
      %51 = vector.extract_strided_slice %43 {offsets = [0, 16], sizes = [8, 16], strides = [1, 1]} : vector<8x32xf32> to vector<8x16xf32>
      %52 = arith.mulf %48, %46 : vector<8x16xf32>
      %53 = arith.mulf %49, %47 : vector<8x16xf32>
      %54 = arith.subf %52, %53 : vector<8x16xf32>
      %55 = arith.mulf %48, %47 : vector<8x16xf32>
      %56 = arith.mulf %49, %46 : vector<8x16xf32>
      %57 = arith.addf %55, %56 : vector<8x16xf32>
      %58 = arith.mulf %50, %46 : vector<8x16xf32>
      %59 = arith.mulf %51, %47 : vector<8x16xf32>
      %60 = arith.subf %58, %59 : vector<8x16xf32>
      %61 = arith.mulf %50, %47 : vector<8x16xf32>
      %62 = arith.mulf %51, %46 : vector<8x16xf32>
      %63 = arith.addf %61, %62 : vector<8x16xf32>
      %64 = vector.extract_strided_slice %54 {offsets = [0, 0], sizes = [8, 4], strides = [1, 1]} : vector<8x16xf32> to vector<8x4xf32>
      %c0_38 = arith.constant 0 : index
      %c0_39 = arith.constant 0 : index
      %65 = vector.load %arg15[%c0_38, %c0_39] : memref<8x32xf32, #tpu.memory_space<vmem>>, vector<8x4xf32>
      tpu.vector_store %arg15[%c0_38, %c0_39], %64 {strides = array<i32>} : memref<8x32xf32, #tpu.memory_space<vmem>>, vector<8x4xf32>,
      %66 = vector.extract_strided_slice %57 {offsets = [0, 0], sizes = [8, 4], strides = [1, 1]} : vector<8x16xf32> to vector<8x4xf32>
      %c0_40 = arith.constant 0 : index
      %c4 = arith.constant 4 : index
      %67 = vector.load %arg15[%c0_40, %c4] : memref<8x32xf32, #tpu.memory_space<vmem>>, vector<8x4xf32>
      tpu.vector_store %arg15[%c0_40, %c4], %66 {strides = array<i32>} : memref<8x32xf32, #tpu.memory_space<vmem>>, vector<8x4xf32>,
      %68 = vector.extract_strided_slice %60 {offsets = [0, 0], sizes = [8, 4], strides = [1, 1]} : vector<8x16xf32> to vector<8x4xf32>
      %c0_41 = arith.constant 0 : index
      %c0_42 = arith.constant 0 : index
      %69 = vector.load %arg16[%c0_41, %c0_42] : memref<8x32xf32, #tpu.memory_space<vmem>>, vector<8x4xf32>
      tpu.vector_store %arg16[%c0_41, %c0_42], %68 {strides = array<i32>} : memref<8x32xf32, #tpu.memory_space<vmem>>, vector<8x4xf32>,
      %70 = vector.extract_strided_slice %63 {offsets = [0, 0], sizes = [8, 4], strides = [1, 1]} : vector<8x16xf32> to vector<8x4xf32>
      %c0_43 = arith.constant 0 : index
      %c4_44 = arith.constant 4 : index
      %71 = vector.load %arg16[%c0_43, %c4_44] : memref<8x32xf32, #tpu.memory_space<vmem>>, vector<8x4xf32>
      tpu.vector_store %arg16[%c0_43, %c4_44], %70 {strides = array<i32>} : memref<8x32xf32, #tpu.memory_space<vmem>>, vector<8x4xf32>,
      %72 = vector.extract_strided_slice %54 {offsets = [0, 4], sizes = [8, 4], strides = [1, 1]} : vector<8x16xf32> to vector<8x4xf32>
      %c0_45 = arith.constant 0 : index
      %c8 = arith.constant 8 : index
      %73 = vector.load %arg15[%c0_45, %c8] : memref<8x32xf32, #tpu.memory_space<vmem>>, vector<8x4xf32>
      tpu.vector_store %arg15[%c0_45, %c8], %72 {strides = array<i32>} : memref<8x32xf32, #tpu.memory_space<vmem>>, vector<8x4xf32>,
      %74 = vector.extract_strided_slice %57 {offsets = [0, 4], sizes = [8, 4], strides = [1, 1]} : vector<8x16xf32> to vector<8x4xf32>
      %c0_46 = arith.constant 0 : index
      %c12 = arith.constant 12 : index
      %75 = vector.load %arg15[%c0_46, %c12] : memref<8x32xf32, #tpu.memory_space<vmem>>, vector<8x4xf32>
      tpu.vector_store %arg15[%c0_46, %c12], %74 {strides = array<i32>} : memref<8x32xf32, #tpu.memory_space<vmem>>, vector<8x4xf32>,
      %76 = vector.extract_strided_slice %60 {offsets = [0, 4], sizes = [8, 4], strides = [1, 1]} : vector<8x16xf32> to vector<8x4xf32>
      %c0_47 = arith.constant 0 : index
      %c8_48 = arith.constant 8 : index
      %77 = vector.load %arg16[%c0_47, %c8_48] : memref<8x32xf32, #tpu.memory_space<vmem>>, vector<8x4xf32>
      tpu.vector_store %arg16[%c0_47, %c8_48], %76 {strides = array<i32>} : memref<8x32xf32, #tpu.memory_space<vmem>>, vector<8x4xf32>,
      %78 = vector.extract_strided_slice %63 {offsets = [0, 4], sizes = [8, 4], strides = [1, 1]} : vector<8x16xf32> to vector<8x4xf32>
      %c0_49 = arith.constant 0 : index
      %c12_50 = arith.constant 12 : index
      %79 = vector.load %arg16[%c0_49, %c12_50] : memref<8x32xf32, #tpu.memory_space<vmem>>, vector<8x4xf32>
      tpu.vector_store %arg16[%c0_49, %c12_50], %78 {strides = array<i32>} : memref<8x32xf32, #tpu.memory_space<vmem>>, vector<8x4xf32>,
      %80 = vector.extract_strided_slice %54 {offsets = [0, 8], sizes = [8, 4], strides = [1, 1]} : vector<8x16xf32> to vector<8x4xf32>
      %c0_51 = arith.constant 0 : index
      %c16 = arith.constant 16 : index
      %81 = vector.load %arg15[%c0_51, %c16] : memref<8x32xf32, #tpu.memory_space<vmem>>, vector<8x4xf32>
      tpu.vector_store %arg15[%c0_51, %c16], %80 {strides = array<i32>} : memref<8x32xf32, #tpu.memory_space<vmem>>, vector<8x4xf32>,
      %82 = vector.extract_strided_slice %57 {offsets = [0, 8], sizes = [8, 4], strides = [1, 1]} : vector<8x16xf32> to vector<8x4xf32>
      %c0_52 = arith.constant 0 : index
      %c20 = arith.constant 20 : index
      %83 = vector.load %arg15[%c0_52, %c20] : memref<8x32xf32, #tpu.memory_space<vmem>>, vector<8x4xf32>
      tpu.vector_store %arg15[%c0_52, %c20], %82 {strides = array<i32>} : memref<8x32xf32, #tpu.memory_space<vmem>>, vector<8x4xf32>,
      %84 = vector.extract_strided_slice %60 {offsets = [0, 8], sizes = [8, 4], strides = [1, 1]} : vector<8x16xf32> to vector<8x4xf32>
      %c0_53 = arith.constant 0 : index
      %c16_54 = arith.constant 16 : index
      %85 = vector.load %arg16[%c0_53, %c16_54] : memref<8x32xf32, #tpu.memory_space<vmem>>, vector<8x4xf32>
      tpu.vector_store %arg16[%c0_53, %c16_54], %84 {strides = array<i32>} : memref<8x32xf32, #tpu.memory_space<vmem>>, vector<8x4xf32>,
      %86 = vector.extract_strided_slice %63 {offsets = [0, 8], sizes = [8, 4], strides = [1, 1]} : vector<8x16xf32> to vector<8x4xf32>
      %c0_55 = arith.constant 0 : index
      %c20_56 = arith.constant 20 : index
      %87 = vector.load %arg16[%c0_55, %c20_56] : memref<8x32xf32, #tpu.memory_space<vmem>>, vector<8x4xf32>
      tpu.vector_store %arg16[%c0_55, %c20_56], %86 {strides = array<i32>} : memref<8x32xf32, #tpu.memory_space<vmem>>, vector<8x4xf32>,
      %88 = vector.extract_strided_slice %54 {offsets = [0, 12], sizes = [8, 4], strides = [1, 1]} : vector<8x16xf32> to vector<8x4xf32>
      %c0_57 = arith.constant 0 : index
      %c24 = arith.constant 24 : index
      %89 = vector.load %arg15[%c0_57, %c24] : memref<8x32xf32, #tpu.memory_space<vmem>>, vector<8x4xf32>
      tpu.vector_store %arg15[%c0_57, %c24], %88 {strides = array<i32>} : memref<8x32xf32, #tpu.memory_space<vmem>>, vector<8x4xf32>,
      %90 = vector.extract_strided_slice %57 {offsets = [0, 12], sizes = [8, 4], strides = [1, 1]} : vector<8x16xf32> to vector<8x4xf32>
      %c0_58 = arith.constant 0 : index
      %c28 = arith.constant 28 : index
      %91 = vector.load %arg15[%c0_58, %c28] : memref<8x32xf32, #tpu.memory_space<vmem>>, vector<8x4xf32>
      tpu.vector_store %arg15[%c0_58, %c28], %90 {strides = array<i32>} : memref<8x32xf32, #tpu.memory_space<vmem>>, vector<8x4xf32>,
      %92 = vector.extract_strided_slice %60 {offsets = [0, 12], sizes = [8, 4], strides = [1, 1]} : vector<8x16xf32> to vector<8x4xf32>
      %c0_59 = arith.constant 0 : index
      %c24_60 = arith.constant 24 : index
      %93 = vector.load %arg16[%c0_59, %c24_60] : memref<8x32xf32, #tpu.memory_space<vmem>>, vector<8x4xf32>
      tpu.vector_store %arg16[%c0_59, %c24_60], %92 {strides = array<i32>} : memref<8x32xf32, #tpu.memory_space<vmem>>, vector<8x4xf32>,
      %94 = vector.extract_strided_slice %63 {offsets = [0, 12], sizes = [8, 4], strides = [1, 1]} : vector<8x16xf32> to vector<8x4xf32>
      %c0_61 = arith.constant 0 : index
      %c28_62 = arith.constant 28 : index
      %95 = vector.load %arg16[%c0_61, %c28_62] : memref<8x32xf32, #tpu.memory_space<vmem>>, vector<8x4xf32>
      tpu.vector_store %arg16[%c0_61, %c28_62], %94 {strides = array<i32>} : memref<8x32xf32, #tpu.memory_space<vmem>>, vector<8x4xf32>,
      %c0_63 = arith.constant 0 : index
      %c0_64 = arith.constant 0 : index
      %96 = vector.load %arg15[%c0_63, %c0_64] : memref<8x32xf32, #tpu.memory_space<vmem>>, vector<8x32xf32>
      %97 = arith.truncf %96 : vector<8x32xf32> to vector<8x32xbf16>
      %c0_65 = arith.constant 0 : index
      %c0_66 = arith.constant 0 : index
      %98 = vector.load %arg16[%c0_65, %c0_66] : memref<8x32xf32, #tpu.memory_space<vmem>>, vector<8x32xf32>
      %99 = arith.truncf %98 : vector<8x32xf32> to vector<8x32xbf16>
      %100 = arith.truncf %45 : vector<8x32xf32> to vector<8x32xbf16>
      %101 = tpu.iota {dimensions = array<i32: 0>} : vector<8x8xi32>
      %102 = tpu.iota {dimensions = array<i32: 1>} : vector<8x8xi32>
      %103 = arith.cmpi sle, %102, %101 : vector<8x8xi32>
      %cst_67 = arith.constant 0.000000e+00 : f32
      %cst_68 = arith.constant -1.000000e+30 : f32
      %104 = vector.broadcast %cst_67 : f32 to vector<8x8xf32>
      %105 = vector.broadcast %cst_68 : f32 to vector<8x8xf32>
      %106 = arith.select %103, %104, %105 : vector<8x8xi1>, vector<8x8xf32>
      %107 = vector.extract_strided_slice %97 {offsets = [0, 0], sizes = [8, 8], strides = [1, 1]} : vector<8x32xbf16> to vector<8x8xbf16>
      %108 = vector.extract_strided_slice %99 {offsets = [0, 0], sizes = [8, 8], strides = [1, 1]} : vector<8x32xbf16> to vector<8x8xbf16>
      %cst_69 = arith.constant dense<0.000000e+00> : vector<8x8xf32>
      %109 = tpu.matmul %107, %108, %cst_69 {dimension_numbers = #tpu.dot_dimension_numbers<[1], [1], [0], [0], [0, 0, 1, 0], [], []>} : vector<8x8xbf16>, vector<8x8xbf16>, vector<8x8xf32> -> vector<8x8xf32>
      %110 = arith.addf %109, %106 : vector<8x8xf32>
      %cst_70 = arith.constant dense<0xFF800000> : vector<8xf32>
      %111 = vector.multi_reduction <maximumf>, %110, %cst_70 [1] : vector<8x8xf32> to vector<8xf32>
      %112 = vector.shape_cast %111 : vector<8xf32> to vector<8x1xf32>
      %113 = vector.broadcast %112 : vector<8x1xf32> to vector<8x8xf32>
      %114 = arith.subf %110, %113 : vector<8x8xf32>
      %115 = math.exp %114 : vector<8x8xf32>
      %cst_71 = arith.constant dense<0.000000e+00> : vector<8xf32>
      %116 = vector.multi_reduction <add>, %115, %cst_71 [1] : vector<8x8xf32> to vector<8xf32>
      %117 = vector.shape_cast %116 : vector<8xf32> to vector<8x1xf32>
      %118 = tpu.reciprocal %117 {approx = true} : vector<8x1xf32> -> vector<8x1xf32>
      %119 = vector.broadcast %118 : vector<8x1xf32> to vector<8x8xf32>
      %120 = arith.mulf %115, %119 : vector<8x8xf32>
      %121 = arith.truncf %120 : vector<8x8xf32> to vector<8x8xbf16>
      %122 = vector.extract_strided_slice %100 {offsets = [0, 0], sizes = [8, 8], strides = [1, 1]} : vector<8x32xbf16> to vector<8x8xbf16>
      %cst_72 = arith.constant dense<0.000000e+00> : vector<8x8xf32>
      %123 = tpu.matmul %121, %122, %cst_72 {dimension_numbers = #tpu.dot_dimension_numbers<[1], [0], [0], [1], [0, 0, 1, 1], [], []>} : vector<8x8xbf16>, vector<8x8xbf16>, vector<8x8xf32> -> vector<8x8xf32>
      %c0_73 = arith.constant 0 : index
      %c0_74 = arith.constant 0 : index
      %124 = vector.load %arg17[%c0_73, %c0_74] : memref<8x32xf32, #tpu.memory_space<vmem>>, vector<8x8xf32>
      tpu.vector_store %arg17[%c0_73, %c0_74], %123 {strides = array<i32>} : memref<8x32xf32, #tpu.memory_space<vmem>>, vector<8x8xf32>,
      %125 = vector.extract_strided_slice %97 {offsets = [0, 8], sizes = [8, 8], strides = [1, 1]} : vector<8x32xbf16> to vector<8x8xbf16>
      %126 = vector.extract_strided_slice %99 {offsets = [0, 8], sizes = [8, 8], strides = [1, 1]} : vector<8x32xbf16> to vector<8x8xbf16>
      %cst_75 = arith.constant dense<0.000000e+00> : vector<8x8xf32>
      %127 = tpu.matmul %125, %126, %cst_75 {dimension_numbers = #tpu.dot_dimension_numbers<[1], [1], [0], [0], [0, 0, 1, 0], [], []>} : vector<8x8xbf16>, vector<8x8xbf16>, vector<8x8xf32> -> vector<8x8xf32>
      %128 = arith.addf %127, %106 : vector<8x8xf32>
      %cst_76 = arith.constant dense<0xFF800000> : vector<8xf32>
      %129 = vector.multi_reduction <maximumf>, %128, %cst_76 [1] : vector<8x8xf32> to vector<8xf32>
      %130 = vector.shape_cast %129 : vector<8xf32> to vector<8x1xf32>
      %131 = vector.broadcast %130 : vector<8x1xf32> to vector<8x8xf32>
      %132 = arith.subf %128, %131 : vector<8x8xf32>
      %133 = math.exp %132 : vector<8x8xf32>
      %cst_77 = arith.constant dense<0.000000e+00> : vector<8xf32>
      %134 = vector.multi_reduction <add>, %133, %cst_77 [1] : vector<8x8xf32> to vector<8xf32>
      %135 = vector.shape_cast %134 : vector<8xf32> to vector<8x1xf32>
      %136 = tpu.reciprocal %135 {approx = true} : vector<8x1xf32> -> vector<8x1xf32>
      %137 = vector.broadcast %136 : vector<8x1xf32> to vector<8x8xf32>
      %138 = arith.mulf %133, %137 : vector<8x8xf32>
      %139 = arith.truncf %138 : vector<8x8xf32> to vector<8x8xbf16>
      %140 = vector.extract_strided_slice %100 {offsets = [0, 8], sizes = [8, 8], strides = [1, 1]} : vector<8x32xbf16> to vector<8x8xbf16>
      %cst_78 = arith.constant dense<0.000000e+00> : vector<8x8xf32>
      %141 = tpu.matmul %139, %140, %cst_78 {dimension_numbers = #tpu.dot_dimension_numbers<[1], [0], [0], [1], [0, 0, 1, 1], [], []>} : vector<8x8xbf16>, vector<8x8xbf16>, vector<8x8xf32> -> vector<8x8xf32>
      %c0_79 = arith.constant 0 : index
      %c8_80 = arith.constant 8 : index
      %142 = vector.load %arg17[%c0_79, %c8_80] : memref<8x32xf32, #tpu.memory_space<vmem>>, vector<8x8xf32>
      tpu.vector_store %arg17[%c0_79, %c8_80], %141 {strides = array<i32>} : memref<8x32xf32, #tpu.memory_space<vmem>>, vector<8x8xf32>,
      %143 = vector.extract_strided_slice %97 {offsets = [0, 16], sizes = [8, 8], strides = [1, 1]} : vector<8x32xbf16> to vector<8x8xbf16>
      %144 = vector.extract_strided_slice %99 {offsets = [0, 16], sizes = [8, 8], strides = [1, 1]} : vector<8x32xbf16> to vector<8x8xbf16>
      %cst_81 = arith.constant dense<0.000000e+00> : vector<8x8xf32>
      %145 = tpu.matmul %143, %144, %cst_81 {dimension_numbers = #tpu.dot_dimension_numbers<[1], [1], [0], [0], [0, 0, 1, 0], [], []>} : vector<8x8xbf16>, vector<8x8xbf16>, vector<8x8xf32> -> vector<8x8xf32>
      %146 = arith.addf %145, %106 : vector<8x8xf32>
      %cst_82 = arith.constant dense<0xFF800000> : vector<8xf32>
      %147 = vector.multi_reduction <maximumf>, %146, %cst_82 [1] : vector<8x8xf32> to vector<8xf32>
      %148 = vector.shape_cast %147 : vector<8xf32> to vector<8x1xf32>
      %149 = vector.broadcast %148 : vector<8x1xf32> to vector<8x8xf32>
      %150 = arith.subf %146, %149 : vector<8x8xf32>
      %151 = math.exp %150 : vector<8x8xf32>
      %cst_83 = arith.constant dense<0.000000e+00> : vector<8xf32>
      %152 = vector.multi_reduction <add>, %151, %cst_83 [1] : vector<8x8xf32> to vector<8xf32>
      %153 = vector.shape_cast %152 : vector<8xf32> to vector<8x1xf32>
      %154 = tpu.reciprocal %153 {approx = true} : vector<8x1xf32> -> vector<8x1xf32>
      %155 = vector.broadcast %154 : vector<8x1xf32> to vector<8x8xf32>
      %156 = arith.mulf %151, %155 : vector<8x8xf32>
      %157 = arith.truncf %156 : vector<8x8xf32> to vector<8x8xbf16>
      %158 = vector.extract_strided_slice %100 {offsets = [0, 16], sizes = [8, 8], strides = [1, 1]} : vector<8x32xbf16> to vector<8x8xbf16>
      %cst_84 = arith.constant dense<0.000000e+00> : vector<8x8xf32>
      %159 = tpu.matmul %157, %158, %cst_84 {dimension_numbers = #tpu.dot_dimension_numbers<[1], [0], [0], [1], [0, 0, 1, 1], [], []>} : vector<8x8xbf16>, vector<8x8xbf16>, vector<8x8xf32> -> vector<8x8xf32>
      %c0_85 = arith.constant 0 : index
      %c16_86 = arith.constant 16 : index
      %160 = vector.load %arg17[%c0_85, %c16_86] : memref<8x32xf32, #tpu.memory_space<vmem>>, vector<8x8xf32>
      tpu.vector_store %arg17[%c0_85, %c16_86], %159 {strides = array<i32>} : memref<8x32xf32, #tpu.memory_space<vmem>>, vector<8x8xf32>,
      %161 = vector.extract_strided_slice %97 {offsets = [0, 24], sizes = [8, 8], strides = [1, 1]} : vector<8x32xbf16> to vector<8x8xbf16>
      %162 = vector.extract_strided_slice %99 {offsets = [0, 24], sizes = [8, 8], strides = [1, 1]} : vector<8x32xbf16> to vector<8x8xbf16>
      %cst_87 = arith.constant dense<0.000000e+00> : vector<8x8xf32>
      %163 = tpu.matmul %161, %162, %cst_87 {dimension_numbers = #tpu.dot_dimension_numbers<[1], [1], [0], [0], [0, 0, 1, 0], [], []>} : vector<8x8xbf16>, vector<8x8xbf16>, vector<8x8xf32> -> vector<8x8xf32>
      %164 = arith.addf %163, %106 : vector<8x8xf32>
      %cst_88 = arith.constant dense<0xFF800000> : vector<8xf32>
      %165 = vector.multi_reduction <maximumf>, %164, %cst_88 [1] : vector<8x8xf32> to vector<8xf32>
      %166 = vector.shape_cast %165 : vector<8xf32> to vector<8x1xf32>
      %167 = vector.broadcast %166 : vector<8x1xf32> to vector<8x8xf32>
      %168 = arith.subf %164, %167 : vector<8x8xf32>
      %169 = math.exp %168 : vector<8x8xf32>
      %cst_89 = arith.constant dense<0.000000e+00> : vector<8xf32>
      %170 = vector.multi_reduction <add>, %169, %cst_89 [1] : vector<8x8xf32> to vector<8xf32>
      %171 = vector.shape_cast %170 : vector<8xf32> to vector<8x1xf32>
      %172 = tpu.reciprocal %171 {approx = true} : vector<8x1xf32> -> vector<8x1xf32>
      %173 = vector.broadcast %172 : vector<8x1xf32> to vector<8x8xf32>
      %174 = arith.mulf %169, %173 : vector<8x8xf32>
      %175 = arith.truncf %174 : vector<8x8xf32> to vector<8x8xbf16>
      %176 = vector.extract_strided_slice %100 {offsets = [0, 24], sizes = [8, 8], strides = [1, 1]} : vector<8x32xbf16> to vector<8x8xbf16>
      %cst_90 = arith.constant dense<0.000000e+00> : vector<8x8xf32>
      %177 = tpu.matmul %175, %176, %cst_90 {dimension_numbers = #tpu.dot_dimension_numbers<[1], [0], [0], [1], [0, 0, 1, 1], [], []>} : vector<8x8xbf16>, vector<8x8xbf16>, vector<8x8xf32> -> vector<8x8xf32>
      %c0_91 = arith.constant 0 : index
      %c24_92 = arith.constant 24 : index
      %178 = vector.load %arg17[%c0_91, %c24_92] : memref<8x32xf32, #tpu.memory_space<vmem>>, vector<8x8xf32>
      tpu.vector_store %arg17[%c0_91, %c24_92], %177 {strides = array<i32>} : memref<8x32xf32, #tpu.memory_space<vmem>>, vector<8x8xf32>,
      %c0_93 = arith.constant 0 : index
      %c0_94 = arith.constant 0 : index
      %179 = vector.load %arg17[%c0_93, %c0_94] : memref<8x32xf32, #tpu.memory_space<vmem>>, vector<8x32xf32>
      %180 = arith.truncf %179 : vector<8x32xf32> to vector<8x32xbf16>
      %c0_95 = arith.constant 0 : index
      %c0_96 = arith.constant 0 : index
      %181 = vector.load %arg6[%c0_95, %c0_96] : memref<32x32xbf16, #tpu.memory_space<vmem>>, vector<32x32xbf16>
      %cst_97 = arith.constant dense<0.000000e+00> : vector<8x32xf32>
      %182 = tpu.matmul %180, %181, %cst_97 {dimension_numbers = #tpu.dot_dimension_numbers<[1], [1], [0], [0], [0, 0, 1, 0], [], []>} : vector<8x32xbf16>, vector<32x32xbf16>, vector<8x32xf32> -> vector<8x32xf32>
      %183 = arith.addf %25, %182 : vector<8x32xf32>
      %c0_98 = arith.constant 0 : index
      %c0_99 = arith.constant 0 : index
      %c0_100 = arith.constant 0 : index
      %184 = vector.load %arg14[%c0_98, %c0_99, %c0_100] : memref<1x8x32xf32, #tpu.memory_space<vmem>>, vector<1x8x32xf32>
      %185 = vector.shape_cast %184 : vector<1x8x32xf32> to vector<8x32xf32>
      %186 = vector.shape_cast %183 : vector<8x32xf32> to vector<1x8x32xf32>
      tpu.vector_store %arg14[%c0_98, %c0_99, %c0_100], %186 {strides = array<i32>} : memref<1x8x32xf32, #tpu.memory_space<vmem>>, vector<1x8x32xf32>,
      %c0_101 = arith.constant 0 : index
      %c0_102 = arith.constant 0 : index
      %187 = vector.load %arg11[%c0_101, %c0_102] : memref<1x32xf32, #tpu.memory_space<vmem>>, vector<1x32xf32>
      %188 = arith.mulf %183, %183 : vector<8x32xf32>
      %cst_103 = arith.constant dense<0.000000e+00> : vector<8xf32>
      %189 = vector.multi_reduction <add>, %188, %cst_103 [1] : vector<8x32xf32> to vector<8xf32>
      %190 = vector.shape_cast %189 : vector<8xf32> to vector<8x1xf32>
      %cst_104 = arith.constant 3.200000e+01 : f32
      %191 = vector.broadcast %cst_104 : f32 to vector<8x1xf32>
      %192 = arith.divf %190, %191 : vector<8x1xf32>
      %cst_105 = arith.constant 9.99999974E-6 : f32
      %193 = vector.broadcast %cst_105 : f32 to vector<8x1xf32>
      %194 = arith.addf %192, %193 : vector<8x1xf32>
      %195 = math.rsqrt %194 : vector<8x1xf32>
      %196 = vector.broadcast %195 : vector<8x1xf32> to vector<8x32xf32>
      %197 = arith.mulf %183, %196 : vector<8x32xf32>
      %198 = vector.broadcast %187 : vector<1x32xf32> to vector<8x32xf32>
      %199 = arith.mulf %197, %198 : vector<8x32xf32>
      %200 = arith.truncf %199 : vector<8x32xf32> to vector<8x32xbf16>
      %c0_106 = arith.constant 0 : index
      %c0_107 = arith.constant 0 : index
      %201 = vector.load %arg18[%c0_106, %c0_107] : memref<8x32xbf16, #tpu.memory_space<vmem>>, vector<8x32xbf16>
      tpu.vector_store %arg18[%c0_106, %c0_107], %200 {strides = array<i32>} : memref<8x32xbf16, #tpu.memory_space<vmem>>, vector<8x32xbf16>,
    } else {
    }
    %c0 = arith.constant 0 : index
    %c0_1 = arith.constant 0 : index
    %3 = vector.load %arg18[%c0, %c0_1] : memref<8x32xbf16, #tpu.memory_space<vmem>>, vector<8x32xbf16>
    %c0_2 = arith.constant 0 : index
    %c0_3 = arith.constant 0 : index
    %4 = vector.load %arg8[%c0_2, %c0_3] : memref<64x32xbf16, #tpu.memory_space<vmem>>, vector<64x32xbf16>
    %cst = arith.constant dense<0.000000e+00> : vector<8x64xf32>
    %5 = tpu.matmul %3, %4, %cst {dimension_numbers = #tpu.dot_dimension_numbers<[1], [1], [0], [0], [0, 0, 1, 0], [], []>} : vector<8x32xbf16>, vector<64x32xbf16>, vector<8x64xf32> -> vector<8x64xf32>
    %c0_4 = arith.constant 0 : index
    %c0_5 = arith.constant 0 : index
    %6 = vector.load %arg10[%c0_4, %c0_5] : memref<64x32xbf16, #tpu.memory_space<vmem>>, vector<64x32xbf16>
    %cst_6 = arith.constant dense<0.000000e+00> : vector<8x64xf32>
    %7 = tpu.matmul %3, %6, %cst_6 {dimension_numbers = #tpu.dot_dimension_numbers<[1], [1], [0], [0], [0, 0, 1, 0], [], []>} : vector<8x32xbf16>, vector<64x32xbf16>, vector<8x64xf32> -> vector<8x64xf32>
    %8 = arith.negf %5 : vector<8x64xf32>
    %9 = math.exp %8 : vector<8x64xf32>
    %cst_7 = arith.constant 1.000000e+00 : f32
    %10 = vector.broadcast %cst_7 : f32 to vector<8x64xf32>
    %11 = arith.addf %10, %9 : vector<8x64xf32>
    %12 = arith.divf %10, %11 : vector<8x64xf32>
    %13 = arith.mulf %5, %12 : vector<8x64xf32>
    %14 = arith.mulf %13, %7 : vector<8x64xf32>
    %15 = arith.truncf %14 : vector<8x64xf32> to vector<8x64xbf16>
    %c0_8 = arith.constant 0 : index
    %c0_9 = arith.constant 0 : index
    %c0_10 = arith.constant 0 : index
    %16 = vector.load %arg14[%c0_8, %c0_9, %c0_10] : memref<1x8x32xf32, #tpu.memory_space<vmem>>, vector<1x8x32xf32>
    %17 = vector.shape_cast %16 : vector<1x8x32xf32> to vector<8x32xf32>
    %c0_11 = arith.constant 0 : index
    %c0_12 = arith.constant 0 : index
    %18 = vector.load %arg9[%c0_11, %c0_12] : memref<32x64xbf16, #tpu.memory_space<vmem>>, vector<32x64xbf16>
    %cst_13 = arith.constant dense<0.000000e+00> : vector<8x32xf32>
    %19 = tpu.matmul %15, %18, %cst_13 {dimension_numbers = #tpu.dot_dimension_numbers<[1], [1], [0], [0], [0, 0, 1, 0], [], []>} : vector<8x64xbf16>, vector<32x64xbf16>, vector<8x32xf32> -> vector<8x32xf32>
    %20 = arith.addf %17, %19 : vector<8x32xf32>
    %c0_14 = arith.constant 0 : index
    %c0_15 = arith.constant 0 : index
    %c0_16 = arith.constant 0 : index
    %21 = vector.load %arg14[%c0_14, %c0_15, %c0_16] : memref<1x8x32xf32, #tpu.memory_space<vmem>>, vector<1x8x32xf32>
    %22 = vector.shape_cast %21 : vector<1x8x32xf32> to vector<8x32xf32>
    %23 = vector.shape_cast %20 : vector<8x32xf32> to vector<1x8x32xf32>
    tpu.vector_store %arg14[%c0_14, %c0_15, %c0_16], %23 {strides = array<i32>} : memref<1x8x32xf32, #tpu.memory_space<vmem>>, vector<1x8x32xf32>,
    return
  }
  func.func @transform_0(%arg0: i32, %arg1: i32) -> (i32, i32, i32) {
    %c0_i32 = arith.constant 0 : i32
    %c0_i32_0 = arith.constant 0 : i32
    %c0_i32_1 = arith.constant 0 : i32
    return %arg0, %c0_i32, %c0_i32_0 : i32, i32, i32
  }
  func.func @transform_1(%arg0: i32, %arg1: i32) -> (i32, i32) {
    %c0_i32 = arith.constant 0 : i32
    %c0_i32_0 = arith.constant 0 : i32
    %c0_i32_1 = arith.constant 0 : i32
    return %c0_i32, %c0_i32_0 : i32, i32
  }
  func.func @transform_2(%arg0: i32, %arg1: i32) -> (i32, i32) {
    %c0_i32 = arith.constant 0 : i32
    %c0_i32_0 = arith.constant 0 : i32
    %c0_i32_1 = arith.constant 0 : i32
    return %c0_i32, %c0_i32_0 : i32, i32
  }
  func.func @transform_3(%arg0: i32, %arg1: i32) -> (i32, i32) {
    %c0_i32 = arith.constant 0 : i32
    %c0_i32_0 = arith.constant 0 : i32
    %c0_i32_1 = arith.constant 0 : i32
    return %c0_i32, %c0_i32_0 : i32, i32
  }
  func.func @transform_4(%arg0: i32, %arg1: i32) -> (i32, i32) {
    %c0_i32 = arith.constant 0 : i32
    %c0_i32_0 = arith.constant 0 : i32
    %c0_i32_1 = arith.constant 0 : i32
    return %c0_i32, %c0_i32_0 : i32, i32
  }
  func.func @transform_5(%arg0: i32, %arg1: i32) -> (i32, i32) {
    %c0_i32 = arith.constant 0 : i32
    %c0_i32_0 = arith.constant 0 : i32
    %c0_i32_1 = arith.constant 0 : i32
    return %c0_i32, %c0_i32_0 : i32, i32
  }
  func.func @transform_6(%arg0: i32, %arg1: i32) -> (i32, i32) {
    %c0_i32 = arith.constant 0 : i32
    %c0_i32_0 = arith.constant 0 : i32
    return %arg1, %c0_i32 : i32, i32
  }
  func.func @transform_7(%arg0: i32, %arg1: i32) -> (i32, i32) {
    %c0_i32 = arith.constant 0 : i32
    %c0_i32_0 = arith.constant 0 : i32
    return %c0_i32, %arg1 : i32, i32
  }
  func.func @transform_8(%arg0: i32, %arg1: i32) -> (i32, i32) {
    %c0_i32 = arith.constant 0 : i32
    %c0_i32_0 = arith.constant 0 : i32
    return %arg1, %c0_i32 : i32, i32
  }
  func.func @transform_9(%arg0: i32, %arg1: i32) -> (i32, i32) {
    %c0_i32 = arith.constant 0 : i32
    %c0_i32_0 = arith.constant 0 : i32
    %c0_i32_1 = arith.constant 0 : i32
    return %c0_i32, %c0_i32_0 : i32, i32
  }
  func.func @transform_10(%arg0: i32, %arg1: i32) -> (i32, i32) {
    %c0_i32 = arith.constant 0 : i32
    %c0_i32_0 = arith.constant 0 : i32
    %c0_i32_1 = arith.constant 0 : i32
    return %c0_i32, %c0_i32_0 : i32, i32
  }
  func.func @transform_11(%arg0: i32, %arg1: i32) -> (i32, i32) {
    %c0_i32 = arith.constant 0 : i32
    %c0_i32_0 = arith.constant 0 : i32
    %c0_i32_1 = arith.constant 0 : i32
    return %c0_i32, %c0_i32_0 : i32, i32
  }
  func.func @transform_12(%arg0: i32, %arg1: i32) -> (i32, i32, i32) {
    %c0_i32 = arith.constant 0 : i32
    %c0_i32_0 = arith.constant 0 : i32
    %c0_i32_1 = arith.constant 0 : i32
    return %arg0, %c0_i32, %c0_i32_0 : i32, i32, i32
  }
}

</mosaic_0001>

<bundles_post_ra>
// kernel: transformer_lm_forward.6
= control target key start
LH: loop header
LB: loop body
LE: loop exit
PB: predicated region body
PF: predicated region fallthrough
CT: control target
= control target key end

     0   :  { %s257_s9 = smov 0   ;;  %s277_s0 = inlined_call_operand.vmem [shape: f32[2,8,32], index: 0, kind: input, shape index: {}]   ;;  %s278_s1 = inlined_call_operand.vmem [shape: f32[1,32], index: 1, kind: input, shape index: {}]   ;;  %s279_s2 = inlined_call_operand.vmem [shape: bf16[2,8,32], index: 2, kind: output, shape index: {}]  }
   0x1 LB: > { %s214_s10 = sadd.s32 4294967295, %s240_s9   ;;  %p218_p0 = scmp.ge.s32.totalorder %s240_s9, 1  ;;  %s240_s9 = sphi %s257_s9, %s12_s9  }
   0x2   : > { %p111_p1 = scmp.lt.s32.totalorder %s240_s9, 3 }
   0x4   : > { %p112_p2 = pnand %p218_p0, %p111_p1 }
   0x5   : > { %p131_p3 = scmp.lt.s32.totalorder (!%p112_p2), %s214_s10, 1 }
   0x6   : > { %115 = sbr.rel (%p112_p2) target bundleno = 181 (0xb5), region = 28 }
   0xb   : > { %s281_s10 = smov (!%p131_p3, %s214_s10), 1  ;;  %vm142_vm0 = vcmask 261120   ;;  %v221_v7 = vld [vmem:[%s278_s1] ss:$0 sm:$0xff]  ;;  %vm159_vm1 = vcmask 257024  }
   0xc   : > { %s219_s11 = sshll.u32 %s281_s10, 3  ;;  %s220_s17 = sshll.u32 %s281_s10, 2 }
   0xd   : > { %s134_s14 = scalar_lea.vmem %s277_s0, %s219_s11  ;;  %s138_s20 = scalar_lea.vmem %s279_s2, %s220_s17 }
   0xe   : > { %v139_v0 = vld [vmem:[%s134_s14] sm:$0xff] }
   0xf   : > { %v141_v1 = vmul.f32 %v139_v0, %v139_v0 }
  0x11   : > { %v143_v2 = vsel %vm142_vm0, %v141_v1, 0.0 }
  0x12   : > { %144 = vadd.xlane.f32.xlu0 %v143_v2 }
  0x9b   : > { %v145_v3 = vpop.xlane.xlu0 %144 }
  0x9c   : > { %v147_v4 = vmul.f32 0.03125, %v145_v3 }
  0x9e   : > { %v148_v5 = vadd.f32 1e-05, %v147_v4 }
  0xa0   : > { %232 = vrsqrt.f32 %v148_v5 }
  0xad   : > { %v233_v6 = vpop.eup %232 }
  0xae   : > { %v150_v8 = vmul.f32 %v233_v6, %v139_v0 }
  0xb0   : > { %v157_v9 = vmul.f32 %v221_v7, %v150_v8 }
  0xb2   : > { %v158_v10 = vpack.c.bf16 %v157_v9, %v157_v9 }
  0xb4   : > { %160 = vst.msk [vmem:[%s138_s20] sm:$0xf] %vm159_vm1, %v158_v10 }
  0xb5 PF: > { %s12_s9 = sadd.s32 1, %s240_s9  }
  0xb6   : > { %p9_p4 = scmp.ge.s32.totalorder %s12_s9, 4  }
  0xb8   :  { %11 = sbr.rel (!%p9_p4) target bundleno = 1 (0x1), region = 58 }

// kernel: transformer_lm_forward.7
= control target key start
LH: loop header
LB: loop body
LE: loop exit
PB: predicated region body
PF: predicated region fallthrough
CT: control target
= control target key end

     0   :  { %7 = vsyncpa [#allocation3], 0  ;;  %s680_s0 = inlined_call_operand.vmem [shape: bf16[2,8,32], index: 0, kind: input, shape index: {}]   ;;  %s681_s1 = inlined_call_operand.vmem [shape: bf16[64,32], index: 1, kind: input, shape index: {}]   ;;  %s682_s2 = inlined_call_operand.hbm [shape: f32[2,8,64], index: 2, kind: output, shape index: {}]  }
   0x1   :  { %9 = vsyncpa [#allocation3 + $0x1], 0  ;;  %s552_s9 = smov 0   ;;  %s554_s10 = smov 0  }
   0x2   :  { %s556_s11 = smov 0   ;;  %s558_s12 = smov 0  }
   0x3   :  { %s560_s13 = smov 0   ;;  %s562_s14 = smov 0  }
   0x4 LB: > { %s361_s15 = sadd.s32 4294967295, %s532_s14   ;;  %s362_s16 = sadd.s32 4294967294, %s532_s14   ;;  %s532_s14 = sphi %s562_s14, %s15_s14   ;;  %s528_s13 = sphi %s560_s13, %s689_s13   ;;  %s524_s12 = sphi %s558_s12, %s688_s12   ;;  %s520_s11 = sphi %s556_s11, %s687_s11   ;;  %s516_s10 = sphi %s554_s10, %s686_s10   ;;  %s512_s9 = sphi %s552_s9, %s685_s9  }
   0x5   : > { %s27_s17 = sadd.s32 1, %s528_s13  ;;  %s88_s18 = sadd.s32 1, %s520_s11 }
   0x6   : > { %p29_p0 = scmp.ge.s32.totalorder %s27_s17, 2  ;;  %p98_p1 = scmp.ne.s32.totalorder %s520_s11, %s516_s10 }
   0x7   : > { %p99_p2 = scmp.eq.s32.totalorder %s361_s15, 1  ;;  %p104_p3 = scmp.ne.s32.totalorder %s516_s10, %s512_s9 }
   0x8   : > { %s691_s17 = smov (%p29_p0, %s27_s17), 0  ;;  %p105_p5 = scmp.eq.s32.totalorder %s362_s16, 1 }
   0x9   : > { %p592_p4 = por %p99_p2, %p98_p1  ;;  %s83_s20 = ssub.s32 %s528_s13, %s691_s17 }
   0xa   : > { %p366_p6 = scmp.ge.s32.totalorder %s532_s14, 1  ;;  %p86_p7 = scmp.eq.s32.totalorder %s83_s20, 0 }
   0xb   : > { %p599_p8 = por %p105_p5, %p104_p3  ;;  %p139_p9 = scmp.lt.s32.totalorder %s532_s14, 3 }
   0xc   : > { %s605_s22 = scalar_select %p86_p7, %s520_s11, %s88_s18  }
   0xd   : > { %p140_p10 = pnand %p366_p6, %p139_p9 }
   0xe   : > { %p165_p11 = scmp.lt.s32.totalorder (!%p140_p10), %s524_s12, 1  ;;  %s162_s8 = sand.u32 (!%p140_p10), 1, %s516_s10  }
   0xf   : > { %143 = sbr.rel (%p140_p10) target bundleno = 262 (0x106), region = 28  ;;  %s367_s15 = sshll.u32 (!%p140_p10), %s162_s8, 3 }
  0x10   : > { %s375_s16 = sshll.u32 (!%p140_p10), %s524_s12, 7  ;;  %s164_s18 = scalar_lea.vmem (!%p140_p10), [#allocation2], %s367_s15 }
  0x11   : > { %s278_s20 = sshll.u32 (!%p140_p10), %s164_s18, 4  ;;  %s634_s25 = scalar_lea.hbm (!%p140_p10), %s682_s2, %s375_s16  ;;  %s636_s20 = int_to_ptr.vmem [resolvable:$true] %s278_s20 }
  0x12   : > { %s264_s26 = scalar_lea.sflag (!%p140_p10), [#allocation3], %s162_s8  ;;  %s456_s27 = scalar_lea.vmem (!%p140_p10), %s636_s20, 128 }
  0x13   : > { %p457_p12 = scmp.ne.s32.totalorder (!%p140_p10), %s636_s20, %s456_s27 }
  0x14   : > { %v452_v0 = vld [vmem:[%s681_s1 + $0x18] sm:$0xff]   ;;  %v534_v1 = vmov 0.0   ;;  %vm205_vm0 = vcmask 261120   ;;  %v453_v3 = vld [vmem:[%s681_s1 + $0x10] sm:$0xff]   ;;  %vm535_vm1 = vmmov 0   ;;  %v454_v5 = vld [vmem:[%s681_s1 + $0x8] sm:$0xff]  }
  0x15   : > { %383 = vmatprep.subr.bf16.mxu0 %v534_v1  ;;  %v219_v2 = vsel %vm205_vm0, %v452_v0, 0  ;;  %391 = vmatprep.mubr.msk.bf16.mxu0 %vm535_vm1, %v534_v1  ;;  %v216_v4 = vsel %vm205_vm0, %v453_v3, 0  ;;  %v213_v6 = vsel %vm205_vm0, %v454_v5, 0  ;;  %v455_v7 = vld [vmem:[%s681_s1] sm:$0xff]   ;;  %s166_s3 = scalar_select %p165_p11, %s524_s12, 1  ;;  %vm261_vm2 = vcmask 523264  }
  0x16   : > { %384 = vmatpush3.bf16.xpose.msra.mxu0 %v219_v2  ;;  %v210_v8 = vsel %vm205_vm0, %v455_v7, 0  ;;  %p458_p13 = pnand %p457_p12, %p592_p4  ;;  %s536_s12 = smov [#allocation2]  }
  0x17   : > { %385 = vmatprep.subr.bf16.mxu0 %v534_v1  ;;  %s368_s4 = sshll.u32 %s166_s3, 2  ;;  %s460_s28 = sshll.u32 %s536_s12, 4  ;;  %s461_s28 = int_to_ptr.vmem [resolvable:$false] %s460_s28 }
  0x18   : > { %s168_s7 = scalar_lea.vmem %s680_s0, %s368_s4  ;;  %p459_p0 = pneg %p458_p13 }
  0x19   : > { %v176_v9 = vld [vmem:[%s168_s7] sm:$0xf]  ;;  %s462_s29 = scalar_lea.vmem %s461_s28, 256  ;;  %p463_p1 = scmp.lt.s32.totalorder %s636_s20, %s461_s28 }
  0x1a   : > { %p464_p2 = scmp.lt.s32.totalorder %s462_s29, %s456_s27 }
  0x1c   : > { %p465_p3 = por %p464_p2, %p463_p1 }
  0x1e   : > { %386 = vmatpush3.bf16.xpose.msra.mxu0 %v216_v4  ;;  %p466_p5 = pnand %p465_p3, %p459_p0 }
  0x1f   : > { %387 = vmatprep.subr.bf16.mxu0 %v534_v1 }
  0x26   : > { %388 = vmatpush3.bf16.xpose.msra.mxu0 %v213_v6 }
  0x27   : > { %389 = vmatprep.subr.bf16.mxu0 %v534_v1 }
  0x2e   : > { %390 = vmatpush3.bf16.xpose.msra.mxu0 %v210_v8 }
  0x35   : > { %392 = vmatmul.mubr.msk.bf16.vlgmr.msra.gmra.mxu0 %vm205_vm0, %v176_v9 }
  0xf5   : > { %v255_v10 = vpop.f32.mrf.mxu0 }
  0xf6   : > { %262 = vst.msk [vmem:[%s164_s18] sm:$0xff] %vm261_vm2, %v255_v10 }
  0xf7   : > { %v393_v11 = vpop.f32.mrf.mxu0 }
  0xf8   : > { %469 = shalt.err (!%p466_p5)
}
  0xf9   : > { %s470_s30 = scalar_lea.hbm %s634_s25, 128  ;;  %s474_s5 = scalar_lea.hbm %s682_s2, 256 }
  0xfa   : > { %p471_p6 = scmp.ne.s32.totalorder %s634_s25, %s470_s30  ;;  %p475_p10 = scmp.lt.s32.totalorder %s634_s25, %s682_s2 }
  0xfb   : > { %p476_p11 = scmp.lt.s32.totalorder %s474_s5, %s470_s30 }
  0xfc   : > { %p472_p7 = pnand %p471_p6, %p592_p4 }
  0xfd   : > { %p477_p12 = por %p476_p11, %p475_p10 }
  0xfe   : > { %p473_p9 = pneg %p472_p7 }
 0x100   : > { %p478_p13 = pnand %p477_p12, %p473_p9 }
 0x102   : > { %481 = shalt.err (!%p478_p13)
}
 0x103   : > { %395 = dma.vmem_to_hbm [thread:$0]  (%p592_p4), %s636_s20, 128, %s634_s25, %s264_s26   ;;  %v258_v12 = vpop.f32.mrf.mxu0 }
 0x105   : > { %v394_v13 = vpop.f32.mrf.mxu0 }
 0x106 PF: > { %p401_p0 = scmp.ge.s32.totalorder %s532_s14, 2  ;;  %s290_s8 = sand.u32 1, %s512_s9  }
 0x107   : > { %s291_s15 = scalar_lea.sflag [#allocation3], %s290_s8 }
 0x108   : > { %p398_p1 = pnand %p401_p0, %p599_p8 }
 0x10a   : > { %p399_p2 = pneg %p398_p1 }
 0x10c   : > { %507 = dma.done.wait (%p399_p2), %s291_s15, 128  }
 0x10d   : > { %509 = vsyncadd (%p399_p2), %s291_s15, 4294967168  ;;  %s15_s14 = sadd.s32 1, %s532_s14   ;;  %s685_s9 = smov %s516_s10 }
 0x10e   : > { %p12_p3 = scmp.ge.s32.totalorder %s15_s14, 4   ;;  %s686_s10 = smov %s520_s11 }
 0x10f   : > { %s687_s11 = smov %s605_s22  ;;  %s688_s12 = smov %s528_s13 }
 0x110   : > { %s689_s13 = smov %s691_s17  ;;  %14 = sbr.rel (!%p12_p3) target bundleno = 4 (0x4), region = 66 }
 0x115   :  { %296 = vsyncpa [#allocation3], 1 }
 0x116   :  { %298 = vsyncpa [#allocation3 + $0x1], 1 }

// kernel: transformer_lm_forward.4
= control target key start
LH: loop header
LB: loop body
LE: loop exit
PB: predicated region body
PF: predicated region fallthrough
CT: control target
= control target key end

     0   :  { %s2079_s21 = smov 0   ;;  %s2081_s22 = smov 0   ;;  %s2363_s0 = inlined_call_operand.vmem [shape: f32[2,8,32], index: 0, kind: input, shape index: {}]   ;;  %s2364_s1 = inlined_call_operand.vmem [shape: bf16[32,32], index: 1, kind: input, shape index: {}]   ;;  %s2365_s2 = inlined_call_operand.vmem [shape: bf16[32,32], index: 2, kind: input, shape index: {}]   ;;  %s2366_s3 = inlined_call_operand.vmem [shape: bf16[32,32], index: 3, kind: input, shape index: {}]   ;;  %s2367_s4 = inlined_call_operand.vmem [shape: bf16[32,32], index: 4, kind: input, shape index: {}]   ;;  %s2368_s5 = inlined_call_operand.vmem [shape: f32[1,32], index: 5, kind: input, shape index: {}]   ;;  %s2369_s6 = inlined_call_operand.vmem [shape: bf16[64,32], index: 6, kind: input, shape index: {}]   ;;  %s2370_s7 = inlined_call_operand.vmem [shape: bf16[32,64], index: 7, kind: input, shape index: {}]   ;;  %s2371_s8 = inlined_call_operand.vmem [shape: bf16[64,32], index: 8, kind: input, shape index: {}]   ;;  %s2372_s9 = inlined_call_operand.vmem [shape: f32[1,32], index: 9, kind: input, shape index: {}]   ;;  %s2373_s10 = inlined_call_operand.vmem [shape: f32[8,16], index: 10, kind: input, shape index: {}]   ;;  %s2374_s11 = inlined_call_operand.vmem [shape: f32[8,16], index: 11, kind: input, shape index: {}]   ;;  %s2375_s12 = inlined_call_operand.vmem [shape: f32[2,8,32], index: 12, kind: output, shape index: {}]  }
   0x1   :  { %s2083_s23 = smov 0  }
   0x2 LB: > { %s34_s24 = sadd.s32 1, %s1997_s22  ;;  %p1708_p0 = scmp.ge.s32.totalorder %s2001_s23, 1  ;;  %s2001_s23 = sphi %s2083_s23, %s22_s23   ;;  %s1997_s22 = sphi %s2081_s22, %s2377_s22   ;;  %s1993_s21 = sphi %s2079_s21, %s2376_s21  }
   0x3   : > { %p36_p1 = scmp.ge.s32.totalorder %s34_s24, 2  ;;  %p404_p2 = scmp.lt.s32.totalorder %s2001_s23, 3 }
   0x5   : > { %s2379_s24 = smov (%p36_p1, %s34_s24), 0  ;;  %p405_p3 = pnand %p1708_p0, %p404_p2 }
   0x6   : > { %p458_p4 = scmp.lt.s32.totalorder (!%p405_p3), %s1993_s21, 1  ;;  %s2006_s17 = smov (!%p405_p3), 112  }
   0x7   : > { %408 = sbr.rel (%p405_p3) target bundleno = 2402 (0x962), region = 68  ;;  %s2007_s18 = smov (!%p405_p3), 8  }
   0x8   : > { %s2008_s19 = smov (!%p405_p3), 4   ;;  %s2009_s20 = smov (!%p405_p3), 12  }
   0x9   : > { %s2010_s26 = smov (!%p405_p3), 120   ;;  %s2011_s27 = smov (!%p405_p3), 104  }
   0xa   : > { %s2013_s15 = smov (!%p405_p3), 24  }
   0xc   : > { %s2381_s21 = smov (!%p458_p4, %s1993_s21), 1  ;;  %vm490_vm0 = vcmask 261120   ;;  %v1937_v3 = vld [vmem:[%s2364_s1 + $0x8] sm:$0xff]   ;;  %v2003_v5 = vmov 0.0   ;;  %vm2004_vm1 = vmmov 0   ;;  %v1939_v8 = vld [vmem:[%s2364_s1] sm:$0xff]  }
   0xd   : > { %s1709_s25 = sshll.u32 %s2381_s21, 3  ;;  %v1938_v4 = vld [vmem:[%s2365_s2 + $0x8] sm:$0xff]   ;;  %1790 = vmatprep.subr.bf16.mxu0 %v2003_v5  ;;  %1798 = vmatprep.subr.bf16.mxu1 %v2003_v5  ;;  %v528_v6 = vsel %vm490_vm0, %v1937_v3, 0  ;;  %v1940_v9 = vld [vmem:[%s2365_s2] sm:$0xff]   ;;  %v525_v10 = vsel %vm490_vm0, %v1939_v8, 0  ;;  %vm728_vm2 = vcmask 31744  }
   0xe   : > { %s461_s28 = scalar_lea.vmem %s2363_s0, %s1709_s25  ;;  %v588_v7 = vsel %vm490_vm0, %v1938_v4, 0  ;;  %1794 = vmatprep.mubr.msk.bf16.mxu0 %vm2004_vm1, %v2003_v5  ;;  %1802 = vmatprep.mubr.msk.bf16.mxu1 %vm2004_vm1, %v2003_v5  ;;  %v585_v11 = vsel %vm490_vm0, %v1940_v9, 0  ;;  %v2139_v12 = vld [vmem:[%s2374_s11] sm:$0xff]  ;;  %v1941_v20 = vld [vmem:[%s2366_s3 + $0x8] sm:$0xff]   ;;  %vm734_vm3 = vcmask 64544   ;;  %vm746_vm4 = vcmask 97344  }
   0xf   : > { %v2105_v0 = vld [vmem:[%s461_s28] sm:$0xff]  ;;  %1791 = vmatpush3.bf16.xpose.msra.mxu0 %v528_v6  ;;  %1799 = vmatpush3.bf16.xpose.msra.mxu1 %v588_v7  ;;  %s2005_s28 = smov 16   ;;  %v648_v23 = vsel %vm490_vm0, %v1941_v20, 0  ;;  %vm751_vm5 = vcmask 130144   ;;  %vm765_vm6 = vcmask 162944   ;;  %vm770_vm7 = vcmask 195744  }
  0x10   : > { %v489_v1 = vmul.f32 %v2105_v0, %v2105_v0  ;;  %1792 = vmatprep.subr.bf16.mxu0 %v2003_v5  ;;  %1800 = vmatprep.subr.bf16.mxu1 %v2003_v5  ;;  %v2144_v13 = vld [vmem:[%s2373_s10] sm:$0xff]  ;;  %vm783_vm8 = vcmask 228544   ;;  %vm788_vm9 = vcmask 261344   ;;  %vm809_vm10 = vcmask 64512  }
  0x11   : > { %694 = vrot.lane.b32.xlu1 %v2139_v12, %s2005_s28  ;;  %v1711_v18 = vld [vmem:[%s2368_s5] ss:$0 sm:$0xff]  ;;  %vm871_vm11 = vcmask 1043456   ;;  %vm1033_vm13 = vcmask 130112   ;;  %vm1149_vm14 = vcmask 195712   ;;  %vm1265_vm15 = vcmask 261312  }
  0x12   : > { %v491_v2 = vsel %vm490_vm0, %v489_v1, 0.0  ;;  %v1942_v24 = vld [vmem:[%s2366_s3] sm:$0xff]  }
  0x13   : > { %492 = vadd.xlane.f32.xlu0 %v491_v2  ;;  %v645_v25 = vsel %vm490_vm0, %v1942_v24, 0  ;;  %v803_v24 = vlaneseq }
  0x17   : > { %1793 = vmatpush3.bf16.xpose.msra.mxu0 %v525_v10  ;;  %1801 = vmatpush3.bf16.xpose.msra.mxu1 %v585_v11 }
  0x18   : > { %1806 = vmatprep.subr.bf16.mxu0 %v2003_v5  ;;  %1814 = vmatprep.subr.bf16.mxu1 %v2003_v5 }
  0x29   : > { %705 = vrot.lane.b32.xlu0 %v2144_v13, %s2005_s28 }
  0x83   : > { %v695_v29 = vpop.permute.xlu1 %694 }
  0x9c   : > { %v493_v14 = vpop.xlane.xlu0 %492 }
  0x9d   : > { %v495_v15 = vmul.f32 0.03125, %v493_v14 }
  0x9f   : > { %v496_v16 = vadd.f32 1e-05, %v495_v15 }
  0xa0   : > { %v706_v26 = vpop.permute.xlu0 %705 }
  0xa1   : > { %1955 = vrsqrt.f32 %v496_v16 }
  0xae   : > { %v1956_v17 = vpop.eup %1955 }
  0xaf   : > { %v498_v19 = vmul.f32 %v1956_v17, %v2105_v0 }
  0xb1   : > { %v505_v21 = vmul.f32 %v1711_v18, %v498_v19 }
  0xb3   : > { %v506_v22 = vpack.c.bf16 %v505_v21, %v505_v21 }
  0xb5   : > { %1795 = vmatmul.mubr.msk.bf16.vlgmr.msra.gmra.mxu0 %vm490_vm0, %v506_v22  ;;  %1803 = vmatmul.mubr.msk.bf16.vlgmr.msra.gmra.mxu1 %vm490_vm0, %v506_v22 }
  0xb6   : > { %1807 = vmatpush3.bf16.xpose.msra.mxu0 %v648_v23  ;;  %1810 = vmatprep.mubr.msk.bf16.mxu0 %vm2004_vm1, %v2003_v5 }
  0xb7   : > { %1808 = vmatprep.subr.bf16.mxu0 %v2003_v5  ;;  %1816 = vmatprep.mubr.msk.bf16.mxu1 %vm2004_vm1, %v2003_v5 }
  0xbe   : > { %1809 = vmatpush3.bf16.xpose.msra.mxu0 %v645_v25  ;;  %v804_v25 = vshrl.u32 %v803_v24, 7 }
  0xbf   : > { %1826 = vmatprep.subr.bf16.mxu0 %v2003_v5 }
  0xc5   : > { %1811 = vmatmul.mubr.msk.bf16.vlgmr.msra.gmra.mxu0 %vm490_vm0, %v506_v22 }
  0xc6   : > { %1828 = vmatprep.mubr.msk.bf16.mxu0 %vm2004_vm1, %v2003_v5 }
 0x175   : > { %v564_v27 = vpop.f32.mrf.mxu0  ;;  %v624_v28 = vpop.f32.mrf.mxu1 }
 0x176   : > { %v722_v30 = vmul.f32 %v706_v26, %v624_v28  ;;  %v715_v35 = vmul.f32 %v695_v29, %v624_v28  ;;  %v708_v38 = vmul.f32 %v706_v26, %v564_v27  ;;  %v697_v39 = vmul.f32 %v695_v29, %v564_v27 }
 0x177   : > { %v1796_v31 = vpop.f32.mrf.mxu0  ;;  %v1804_v32 = vpop.f32.mrf.mxu1  ;;  %v721_v44 = vmul.f32 %v2139_v12, %v624_v28  ;;  %v714_v47 = vmul.f32 %v2144_v13, %v624_v28  ;;  %v692_v51 = vmul.f32 %v2144_v13, %v564_v27  ;;  %v703_v54 = vmul.f32 %v2139_v12, %v564_v27 }
 0x178   : > { %724 = vrot.lane.b32.xlu1 %v722_v30, %s2006_s17  ;;  %v806_v26 = vand.u32 127, %v803_v24  ;;  %v2012_v27 = vmov -1e+30  }
 0x179   : > { %v567_v33 = vpop.f32.mrf.mxu0  ;;  %v627_v34 = vpop.f32.mrf.mxu1 }
 0x17a   : > { %vm807_vm12 = vcmp.le.s32.totalorder %v806_v26, %v804_v25 }
 0x17b   : > { %v1797_v36 = vpop.f32.mrf.mxu0  ;;  %v1805_v37 = vpop.f32.mrf.mxu1  ;;  %v808_v28 = vsel %vm807_vm12, 0.0, %v2012_v27 }
 0x17c   : > { %717 = vrot.lane.b32.xlu1 %v715_v35, %s2006_s17 }
 0x180   : > { %710 = vrot.lane.b32.xlu1 %v708_v38, %s2006_s17 }
 0x184   : > { %699 = vrot.lane.b32.xlu1 %v697_v39, %s2006_s17 }
 0x185   : > { %v2177_v40 = vpop.f32.mrf.mxu0 }
 0x186   : > { %v2210_v11 = vpack.c.bf16 %v2177_v40, %v2177_v40 }
 0x187   : > { %v1812_v41 = vpop.f32.mrf.mxu0 }
 0x188   : > { %v873_v14 = vsel %vm871_vm11, %v2210_v11, 0 }
 0x189   : > { %v687_v42 = vpop.f32.mrf.mxu0 }
 0x18b   : > { %v1813_v43 = vpop.f32.mrf.mxu0 }
 0x1ea   : > { %v725_v45 = vpop.permute.xlu1 %724 }
 0x1eb   : > { %v727_v46 = vadd.f32 %v725_v45, %v721_v44 }
 0x1ed   : > { %758 = vrot.lane.b32.xlu0 %v727_v46, %s2007_s18  ;;  %738 = vrot.lane.b32.xlu1 %v727_v46, %s2008_s19 }
 0x1ee   : > { %v718_v48 = vpop.permute.xlu1 %717 }
 0x1ef   : > { %v720_v49 = vsub.f32 %v714_v47, %v718_v48 }
 0x1f1   : > { %776 = vrot.lane.b32.xlu0 %v727_v46, %s2009_s20  ;;  %754 = vrot.lane.b32.xlu1 %v720_v49, %s2008_s19  ;;  %736 = vst.msk [vmem:[#allocation3] sm:$0xff] %vm728_vm2, %v720_v49 }
 0x1f2   : > { %v711_v50 = vpop.permute.xlu1 %710 }
 0x1f3   : > { %v713_v55 = vadd.f32 %v711_v50, %v703_v54 }
 0x1f5   : > { %794 = vrot.lane.b32.xlu0 %v727_v46, %s2005_s28  ;;  %772 = vrot.lane.b32.xlu1 %v720_v49, %s2007_s18 }
 0x1f6   : > { %v700_v52 = vpop.permute.xlu1 %699 }
 0x1f7   : > { %v702_v53 = vsub.f32 %v692_v51, %v700_v52 }
 0x1f9   : > { %790 = vrot.lane.b32.xlu1 %v720_v49, %s2009_s20  ;;  %743 = vrot.lane.b32.xlu0 %v702_v53, %s2008_s19  ;;  %729 = vst.msk [vmem:[#allocation2] sm:$0xff] %vm728_vm2, %v702_v53  ;;  %vm1351_vm2 = vcmask 257024  }
 0x1fd   : > { %731 = vrot.lane.b32.xlu1 %v713_v55, %s2008_s19  ;;  %762 = vrot.lane.b32.xlu0 %v702_v53, %s2007_s18 }
 0x201   : > { %748 = vrot.lane.b32.xlu1 %v713_v55, %s2007_s18  ;;  %780 = vrot.lane.b32.xlu0 %v702_v53, %s2009_s20 }
 0x205   : > { %767 = vrot.lane.b32.xlu1 %v713_v55, %s2009_s20 }
 0x209   : > { %785 = vrot.lane.b32.xlu1 %v713_v55, %s2005_s28 }
 0x25f   : > { %v759_v56 = vpop.permute.xlu0 %758  ;;  %v739_v57 = vpop.permute.xlu1 %738 }
 0x260   : > { %741 = vst.msk [vmem:[#allocation3] sm:$0xff] %vm734_vm3, %v739_v57 }
 0x263   : > { %v777_v58 = vpop.permute.xlu0 %776  ;;  %v755_v59 = vpop.permute.xlu1 %754 }
 0x264   : > { %757 = vst.msk [vmem:[#allocation3] sm:$0xff] %vm746_vm4, %v755_v59 }
 0x265   : > { %761 = vst.msk [vmem:[#allocation3] sm:$0xff] %vm751_vm5, %v759_v56 }
 0x267   : > { %v795_v60 = vpop.permute.xlu0 %794  ;;  %v773_v61 = vpop.permute.xlu1 %772 }
 0x268   : > { %775 = vst.msk [vmem:[#allocation3] sm:$0xff] %vm765_vm6, %v773_v61 }
 0x269   : > { %779 = vst.msk [vmem:[#allocation3] sm:$0xff] %vm770_vm7, %v777_v58 }
 0x26b   : > { %v791_v62 = vpop.permute.xlu1 %790  ;;  %v744_v63 = vpop.permute.xlu0 %743 }
 0x26c   : > { %793 = vst.msk [vmem:[#allocation3] sm:$0xff] %vm783_vm8, %v791_v62 }
 0x26d   : > { %797 = vst.msk [vmem:[#allocation3] sm:$0xff] %vm788_vm9, %v795_v60 }
 0x26f   : > { %v732_v1 = vpop.permute.xlu1 %731  ;;  %v763_v2 = vpop.permute.xlu0 %762 }
 0x270   : > { %735 = vst.msk [vmem:[#allocation2] sm:$0xff] %vm734_vm3, %v732_v1  ;;  %vm1542_vm3 = vcmask 523264  }
 0x271   : > { %747 = vst.msk [vmem:[#allocation2] sm:$0xff] %vm746_vm4, %v744_v63 }
 0x273   : > { %v749_v3 = vpop.permute.xlu1 %748  ;;  %v781_v9 = vpop.permute.xlu0 %780 }
 0x274   : > { %752 = vst.msk [vmem:[#allocation2] sm:$0xff] %vm751_vm5, %v749_v3  ;;  %v800_v4 = vld [vmem:[#allocation3] sm:$0xff] }
 0x275   : > { %766 = vst.msk [vmem:[#allocation2] sm:$0xff] %vm765_vm6, %v763_v2  ;;  %v801_v6 = vpack.c.bf16 %v800_v4, %v800_v4 }
 0x277   : > { %920 = vrot.lane.b32.xlu0 %v801_v6, %s2010_s26  ;;  %v768_v7 = vpop.permute.xlu1 %767  ;;  %v814_v8 = vsel %vm809_vm10, %v801_v6, 0 }
 0x278   : > { %771 = vst.msk [vmem:[#allocation2] sm:$0xff] %vm770_vm7, %v768_v7  ;;  %1815 = vmatpush3.bf16.xpose.msra.mxu1 %v814_v8 }
 0x279   : > { %784 = vst.msk [vmem:[#allocation2] sm:$0xff] %vm783_vm8, %v781_v9  ;;  %1820 = vmatprep.subr.bf16.mxu1 %v2003_v5 }
 0x27b   : > { %1037 = vrot.lane.b32.xlu0 %v801_v6, %s2006_s17  ;;  %v786_v10 = vpop.permute.xlu1 %785 }
 0x27c   : > { %789 = vst.msk [vmem:[#allocation2] sm:$0xff] %vm788_vm9, %v786_v10 }
 0x27f   : > { %1153 = vrot.lane.b32.xlu0 %v801_v6, %s2011_s27 }
 0x283   : > { %v798_v12 = vld [vmem:[#allocation2] sm:$0xff] }
 0x284   : > { %v799_v13 = vpack.c.bf16 %v798_v12, %v798_v12 }
 0x286   : > { %917 = vrot.lane.b32.xlu1 %v799_v13, %s2010_s26  ;;  %1817 = vmatmul.mubr.msk.bf16.vlgmr.msra.gmra.mxu1 %vm809_vm10, %v799_v13 }
 0x287   : > { %1821 = vmatpush3.bf16.msra.mxu1 %v873_v14  ;;  %1822 = vmatprep.mubr.msk.bf16.mxu1 %vm2004_vm1, %v2003_v5 }
 0x288   : > { %1832 = vmatprep.subr.bf16.mxu1 %v2003_v5 }
 0x28a   : > { %1035 = vrot.lane.b32.xlu1 %v799_v13, %s2006_s17 }
 0x28e   : > { %1151 = vrot.lane.b32.xlu1 %v799_v13, %s2011_s27 }
 0x2e9   : > { %v921_v15 = vpop.permute.xlu0 %920 }
 0x2ea   : > { %v926_v16 = vsel %vm809_vm10, %v921_v15, 0 }
 0x2eb   : > { %1827 = vmatpush3.bf16.xpose.msra.mxu0 %v926_v16 }
 0x2ec   : > { %1838 = vmatprep.subr.bf16.mxu0 %v2003_v5 }
 0x2ed   : > { %v1038_v17 = vpop.permute.xlu0 %1037 }
 0x2ee   : > { %v1043_v19 = vsel %vm809_vm10, %v1038_v17, 0 }
 0x2f1   : > { %v1154_v20 = vpop.permute.xlu0 %1153 }
 0x2f2   : > { %v1159_v22 = vsel %vm809_vm10, %v1154_v20, 0 }
 0x2f8   : > { %v918_v18 = vpop.permute.xlu1 %917 }
 0x2f9   : > { %1829 = vmatmul.mubr.msk.bf16.vlgmr.msra.gmra.mxu0 %vm809_vm10, %v918_v18 }
 0x2fa   : > { %1839 = vmatpush3.bf16.xpose.msra.mxu0 %v1043_v19  ;;  %1840 = vmatprep.mubr.msk.bf16.mxu0 %vm2004_vm1, %v2003_v5 }
 0x2fb   : > { %1850 = vmatprep.subr.bf16.mxu0 %v2003_v5 }
 0x2fc   : > { %v1036_v21 = vpop.permute.xlu1 %1035 }
 0x300   : > { %v1152_v23 = vpop.permute.xlu1 %1151 }
 0x301   : > { %1841 = vmatmul.mubr.msk.bf16.vlgmr.msra.gmra.mxu0 %vm809_vm10, %v1036_v21 }
 0x302   : > { %1851 = vmatpush3.bf16.xpose.msra.mxu0 %v1159_v22  ;;  %1852 = vmatprep.mubr.msk.bf16.mxu0 %vm2004_vm1, %v2003_v5 }
 0x303   : > { %1862 = vmatprep.subr.bf16.mxu0 %v2003_v5 }
 0x309   : > { %1853 = vmatmul.mubr.msk.bf16.vlgmr.msra.gmra.mxu0 %vm809_vm10, %v1152_v23 }
 0x30a   : > { %1866 = vmatprep.mubr.msk.bf16.mxu0 %vm2004_vm1, %v2003_v5 }
 0x346   : > { %v850_v29 = vpop.f32.mrf.mxu1 }
 0x347   : > { %v851_v30 = vadd.f32 %v850_v29, %v808_v28 }
 0x348   : > { %v1818_v31 = vpop.f32.mrf.mxu1 }
 0x349   : > { %v856_v32 = vsel %vm809_vm10, %v851_v30, -inf }
 0x34a   : > { %857 = vmax.xlane.f32.xlu0 %v856_v32  ;;  %v853_v33 = vpop.f32.mrf.mxu1 }
 0x34c   : > { %v1819_v34 = vpop.f32.mrf.mxu1 }
 0x3b9   : > { %v962_v35 = vpop.f32.mrf.mxu0 }
 0x3ba   : > { %v963_v36 = vadd.f32 %v962_v35, %v808_v28 }
 0x3bb   : > { %v1830_v37 = vpop.f32.mrf.mxu0 }
 0x3bc   : > { %v968_v38 = vsel %vm809_vm10, %v963_v36, -inf  ;;  %v1943_v37 = vld [vmem:[%s2367_s4 + $0x8] sm:$0xff]  }
 0x3bd   : > { %969 = vmax.xlane.f32.xlu1 %v968_v38  ;;  %v965_v39 = vpop.f32.mrf.mxu0  ;;  %v1290_v38 = vsel %vm490_vm0, %v1943_v37, 0 }
 0x3be   : > { %1863 = vmatpush3.bf16.xpose.msra.mxu0 %v1290_v38 }
 0x3bf   : > { %v1831_v40 = vpop.f32.mrf.mxu0  ;;  %1864 = vmatprep.subr.bf16.mxu0 %v2003_v5 }
 0x3c1   : > { %v1079_v41 = vpop.f32.mrf.mxu0 }
 0x3c2   : > { %v1080_v42 = vadd.f32 %v1079_v41, %v808_v28 }
 0x3c3   : > { %v1842_v43 = vpop.f32.mrf.mxu0 }
 0x3c4   : > { %v1085_v44 = vsel %vm809_vm10, %v1080_v42, -inf }
 0x3c5   : > { %v1082_v45 = vpop.f32.mrf.mxu0  ;;  %1086 = vmax.xlane.f32.xlu0 %v1085_v44 }
 0x3c7   : > { %v1843_v46 = vpop.f32.mrf.mxu0 }
 0x3c9   : > { %v1195_v47 = vpop.f32.mrf.mxu0 }
 0x3ca   : > { %v1196_v48 = vadd.f32 %v1195_v47, %v808_v28 }
 0x3cb   : > { %v1854_v49 = vpop.f32.mrf.mxu0 }
 0x3cc   : > { %v1201_v50 = vsel %vm809_vm10, %v1196_v48, -inf }
 0x3cd   : > { %v1198_v51 = vpop.f32.mrf.mxu0  ;;  %1202 = vmax.xlane.f32.xlu0 %v1201_v50 }
 0x3cf   : > { %v1855_v52 = vpop.f32.mrf.mxu0 }
 0x3d3   : > { %v858_v53 = vpop.xlane.xlu0 %857 }
 0x3d4   : > { %v859_v54 = vsub.f32 %v851_v30, %v858_v53 }
 0x3d6   : > { %v860_v55 = vmul.f32 1.442695, %v859_v54 }
 0x3d8   : > { %1957 = vpow2.f32 %v860_v55 }
 0x3e5   : > { %v1958_v56 = vpop.eup %1957 }
 0x3e6   : > { %v862_v57 = vsel %vm809_vm10, %v1958_v56, 0.0 }
 0x3e7   : > { %863 = vadd.xlane.f32.xlu1 %v862_v57 }
 0x3f8   : > { %981 = vrot.lane.b32.xlu1 %v2210_v11, %s2010_s26 }
 0x446   : > { %v970_v58 = vpop.xlane.xlu1 %969 }
 0x447   : > { %v971_v59 = vsub.f32 %v963_v36, %v970_v58 }
 0x449   : > { %v972_v60 = vmul.f32 1.442695, %v971_v59 }
 0x44b   : > { %1959 = vpow2.f32 %v972_v60 }
 0x44e   : > { %v1087_v61 = vpop.xlane.xlu0 %1086 }
 0x44f   : > { %v1088_v62 = vsub.f32 %v1080_v42, %v1087_v61  ;;  %v1944_v42 = vld [vmem:[%s2367_s4] sm:$0xff]  }
 0x450   : > { %v1287_v44 = vsel %vm490_vm0, %v1944_v42, 0 }
 0x451   : > { %v1089_v63 = vmul.f32 1.442695, %v1088_v62  ;;  %1865 = vmatpush3.bf16.xpose.msra.mxu0 %v1287_v44 }
 0x452   : > { %1882 = vmatprep.subr.bf16.mxu0 %v2003_v5 }
 0x453   : > { %1961 = vpow2.f32 %v1089_v63 }
 0x456   : > { %v1203_v1 = vpop.xlane.xlu0 %1202 }
 0x457   : > { %v1204_v2 = vsub.f32 %v1196_v48, %v1203_v1 }
 0x458   : > { %v1960_v3 = vpop.eup %1959 }
 0x459   : > { %v1205_v4 = vmul.f32 1.442695, %v1204_v2  ;;  %v974_v6 = vsel %vm809_vm10, %v1960_v3, 0.0  ;;  %v1945_v2 = vld [vmem:[%s2369_s6 + $0x18] sm:$0xff]  }
 0x45a   : > { %975 = vadd.xlane.f32.xlu0 %v974_v6  ;;  %v1947_v6 = vld [vmem:[%s2369_s6 + $0x10] sm:$0xff]  }
 0x45b   : > { %1963 = vpow2.f32 %v1205_v4  ;;  %v1396_v4 = vsel %vm490_vm0, %v1945_v2, 0 }
 0x460   : > { %v1962_v7 = vpop.eup %1961 }
 0x461   : > { %v1091_v8 = vsel %vm809_vm10, %v1962_v7, 0.0 }
 0x462   : > { %1092 = vadd.xlane.f32.xlu1 %v1091_v8  ;;  %v1393_v8 = vsel %vm490_vm0, %v1947_v6, 0 }
 0x468   : > { %v1964_v9 = vpop.eup %1963 }
 0x469   : > { %v1207_v10 = vsel %vm809_vm10, %v1964_v9, 0.0 }
 0x46a   : > { %1208 = vadd.xlane.f32.xlu0 %v1207_v10  ;;  %v1949_v10 = vld [vmem:[%s2369_s6 + $0x8] sm:$0xff]  }
 0x470   : > { %v864_v12 = vpop.xlane.xlu1 %863 }
 0x471   : > { %1965 = vrcp.f32 %v864_v12  ;;  %v1950_v12 = vld [vmem:[%s2371_s8 + $0x8] sm:$0xff]  }
 0x473   : > { %1213 = vrot.lane.b32.xlu1 %v2210_v11, %s2011_s27 }
 0x474   : > { %v982_v15 = vpop.permute.xlu1 %981 }
 0x475   : > { %v987_v17 = vsel %vm871_vm11, %v982_v15, 0  ;;  %v1951_v15 = vld [vmem:[%s2369_s6] sm:$0xff]  }
 0x47e   : > { %v1966_v13 = vpop.eup %1965 }
 0x47f   : > { %v866_v14 = vmul.f32 %v1966_v13, %v1958_v56  ;;  %v1390_v13 = vsel %vm490_vm0, %v1949_v10, 0 }
 0x480   : > { %1097 = vrot.lane.b32.xlu0 %v2210_v11, %s2006_s17  ;;  %s2289_s17 = scalar_lea.vmem %s2375_s12, %s1709_s25 }
 0x481   : > { %v867_v16 = vpack.c.bf16 %v866_v14, %v866_v14  ;;  %v1470_v14 = vsel %vm490_vm0, %v1950_v12, 0 }
 0x483   : > { %1823 = vmatmul.mubr.msk.bf16.vlgmr.msra.gmra.mxu1 %vm809_vm10, %v867_v16  ;;  %v1952_v16 = vld [vmem:[%s2371_s8] sm:$0xff]  }
 0x484   : > { %1833 = vmatpush3.bf16.msra.mxu1 %v987_v17  ;;  %1834 = vmatprep.mubr.msk.bf16.mxu1 %vm2004_vm1, %v2003_v5  ;;  %v1387_v17 = vsel %vm490_vm0, %v1951_v15, 0 }
 0x485   : > { %1844 = vmatprep.subr.bf16.mxu1 %v2003_v5 }
 0x4e3   : > { %v976_v18 = vpop.xlane.xlu0 %975 }
 0x4e4   : > { %1967 = vrcp.f32 %v976_v18  ;;  %v1467_v18 = vsel %vm490_vm0, %v1952_v16, 0 }
 0x4eb   : > { %v1093_v19 = vpop.xlane.xlu1 %1092 }
 0x4ec   : > { %1969 = vrcp.f32 %v1093_v19 }
 0x4ef   : > { %v1214_v27 = vpop.permute.xlu1 %1213 }
 0x4f0   : > { %v1219_v29 = vsel %vm871_vm11, %v1214_v27, 0  ;;  %v1953_v27 = vld [vmem:[%s2370_s7 + $0x8] sm:$0xff]  }
 0x4f1   : > { %v1968_v20 = vpop.eup %1967 }
 0x4f2   : > { %v978_v21 = vmul.f32 %v1968_v20, %v1960_v3  ;;  %v1946_v3 = vld [vmem:[%s2371_s8 + $0x18] sm:$0xff]  }
 0x4f3   : > { %v1209_v22 = vpop.xlane.xlu0 %1208 }
 0x4f4   : > { %1971 = vrcp.f32 %v1209_v22  ;;  %v979_v11 = vpack.c.bf16 %v978_v21, %v978_v21 }
 0x4f6   : > { %1835 = vmatmul.mubr.msk.bf16.vlgmr.msra.gmra.mxu1 %vm809_vm10, %v979_v11  ;;  %v1732_v11 = vld [vmem:[%s2372_s9] ss:$0 sm:$0xff] }
 0x4f7   : > { %v1098_v23 = vpop.permute.xlu0 %1097  ;;  %1846 = vmatprep.mubr.msk.bf16.mxu1 %vm2004_vm1, %v2003_v5 }
 0x4f8   : > { %v1103_v24 = vsel %vm871_vm11, %v1098_v23, 0 }
 0x4f9   : > { %v1970_v25 = vpop.eup %1969  ;;  %1845 = vmatpush3.bf16.msra.mxu1 %v1103_v24 }
 0x4fa   : > { %1856 = vmatprep.subr.bf16.mxu1 %v2003_v5  ;;  %v1095_v26 = vmul.f32 %v1970_v25, %v1962_v7  ;;  %v1948_v7 = vld [vmem:[%s2371_s8 + $0x10] sm:$0xff]  }
 0x4fc   : > { %v1096_v28 = vpack.c.bf16 %v1095_v26, %v1095_v26 }
 0x4fe   : > { %1847 = vmatmul.mubr.msk.bf16.vlgmr.msra.gmra.mxu1 %vm809_vm10, %v1096_v28  ;;  %v1550_v28 = vsel %vm1542_vm3, %v1953_v27, 0 }
 0x4ff   : > { %1857 = vmatpush3.bf16.msra.mxu1 %v1219_v29  ;;  %1858 = vmatprep.mubr.msk.bf16.mxu1 %vm2004_vm1, %v2003_v5  ;;  %v1954_v29 = vld [vmem:[%s2370_s7] sm:$0xff]  }
 0x500   : > { %1870 = vmatprep.subr.bf16.mxu1 %v2003_v5 }
 0x501   : > { %v1972_v30 = vpop.eup %1971 }
 0x502   : > { %v1211_v31 = vmul.f32 %v1972_v30, %v1964_v9  ;;  %v1473_v9 = vsel %vm490_vm0, %v1948_v7, 0  ;;  %v1547_v30 = vsel %vm1542_vm3, %v1954_v29, 0 }
 0x504   : > { %v1212_v32 = vpack.c.bf16 %v1211_v31, %v1211_v31 }
 0x506   : > { %1859 = vmatmul.mubr.msk.bf16.vlgmr.msra.gmra.mxu1 %vm809_vm10, %v1212_v32 }
 0x507   : > { %1878 = vmatprep.mubr.msk.bf16.mxu1 %vm2004_vm1, %v2003_v5  ;;  %1871 = vmatpush3.bf16.xpose.msra.mxu1 %v1396_v4 }
 0x508   : > { %1872 = vmatprep.subr.bf16.mxu1 %v2003_v5 }
 0x50f   : > { %1873 = vmatpush3.bf16.xpose.msra.mxu1 %v1393_v8 }
 0x510   : > { %1874 = vmatprep.subr.bf16.mxu1 %v2003_v5 }
 0x517   : > { %1875 = vmatpush3.bf16.xpose.msra.mxu1 %v1390_v13 }
 0x518   : > { %1876 = vmatprep.subr.bf16.mxu1 %v2003_v5 }
 0x51f   : > { %1877 = vmatpush3.bf16.xpose.msra.mxu1 %v1387_v17 }
 0x520   : > { %1894 = vmatprep.subr.bf16.mxu1 %v2003_v5 }
 0x543   : > { %v909_v33 = vpop.f32.mrf.mxu1 }
 0x544   : > { %915 = vst.msk [vmem:[#allocation4] sm:$0xff] %vm809_vm10, %v909_v33 }
 0x545   : > { %v1824_v34 = vpop.f32.mrf.mxu1 }
 0x547   : > { %v912_v35 = vpop.f32.mrf.mxu1 }
 0x549   : > { %v1825_v36 = vpop.f32.mrf.mxu1 }
 0x5b6   : > { %v1023_v39 = vpop.f32.mrf.mxu1 }
 0x5b7   : > { %1030 = vrot.lane.b32.xlu1 %v1023_v39, %s2007_s18 }
 0x5b8   : > { %v1836_v40 = vpop.f32.mrf.mxu1 }
 0x5ba   : > { %v1026_v41 = vpop.f32.mrf.mxu1 }
 0x5bc   : > { %v1837_v43 = vpop.f32.mrf.mxu1 }
 0x5be   : > { %v1139_v45 = vpop.f32.mrf.mxu1 }
 0x5bf   : > { %1146 = vrot.lane.b32.xlu0 %v1139_v45, %s2005_s28 }
 0x5c0   : > { %v1848_v46 = vpop.f32.mrf.mxu1 }
 0x5c2   : > { %v1142_v47 = vpop.f32.mrf.mxu1 }
 0x5c4   : > { %v1849_v48 = vpop.f32.mrf.mxu1 }
 0x5c6   : > { %v1255_v49 = vpop.f32.mrf.mxu1 }
 0x5c7   : > { %1262 = vrot.lane.b32.xlu1 %v1255_v49, %s2013_s15 }
 0x5c8   : > { %v1860_v50 = vpop.f32.mrf.mxu1 }
 0x5ca   : > { %v1258_v51 = vpop.f32.mrf.mxu1 }
 0x5cc   : > { %v1861_v52 = vpop.f32.mrf.mxu1 }
 0x629   : > { %v1031_v53 = vpop.permute.xlu1 %1030 }
 0x62a   : > { %1034 = vst.msk [vmem:[#allocation4] sm:$0xff] %vm1033_vm13, %v1031_v53 }
 0x631   : > { %v1147_v54 = vpop.permute.xlu0 %1146 }
 0x632   : > { %1150 = vst.msk [vmem:[#allocation4] sm:$0xff] %vm1149_vm14, %v1147_v54 }
 0x639   : > { %v1263_v55 = vpop.permute.xlu1 %1262 }
 0x63a   : > { %1266 = vst.msk [vmem:[#allocation4] sm:$0xff] %vm1265_vm15, %v1263_v55 }
 0x641   : > { %v1267_v56 = vld [vmem:[#allocation4] sm:$0xff] }
 0x642   : > { %v1268_v57 = vpack.c.bf16 %v1267_v56, %v1267_v56 }
 0x644   : > { %1867 = vmatmul.mubr.msk.bf16.vlgmr.msra.gmra.mxu0 %vm490_vm0, %v1268_v57 }
 0x645   : > { %1890 = vmatprep.mubr.msk.bf16.mxu0 %vm2004_vm1, %v2003_v5 }
 0x704   : > { %v1326_v58 = vpop.f32.mrf.mxu0 }
 0x705   : > { %v1332_v59 = vadd.f32 %v1326_v58, %v2105_v0  ;;  %v1476_v0 = vsel %vm490_vm0, %v1946_v3, 0 }
 0x706   : > { %v1868_v60 = vpop.f32.mrf.mxu0  ;;  %1883 = vmatpush3.bf16.xpose.msra.mxu0 %v1476_v0 }
 0x707   : > { %v1335_v61 = vmul.f32 %v1332_v59, %v1332_v59  ;;  %1333 = vst.msk [vmem:[%s2289_s17] sm:$0xff] %vm490_vm0, %v1332_v59  ;;  %1884 = vmatprep.subr.bf16.mxu0 %v2003_v5 }
 0x708   : > { %v1329_v62 = vpop.f32.mrf.mxu0 }
 0x709   : > { %v1336_v63 = vsel %vm490_vm0, %v1335_v61, 0.0 }
 0x70a   : > { %1337 = vadd.xlane.f32.xlu0 %v1336_v63  ;;  %v1869_v1 = vpop.f32.mrf.mxu0 }
 0x70e   : > { %1885 = vmatpush3.bf16.xpose.msra.mxu0 %v1473_v9  ;;  %v1527_v45 = vld [vmem:[%s2289_s17] sm:$0xff] }
 0x70f   : > { %1886 = vmatprep.subr.bf16.mxu0 %v2003_v5 }
 0x716   : > { %1887 = vmatpush3.bf16.xpose.msra.mxu0 %v1470_v14 }
 0x717   : > { %1888 = vmatprep.subr.bf16.mxu0 %v2003_v5 }
 0x71e   : > { %1889 = vmatpush3.bf16.xpose.msra.mxu0 %v1467_v18 }
 0x793   : > { %v1338_v19 = vpop.xlane.xlu0 %1337 }
 0x794   : > { %v1339_v20 = vmul.f32 0.03125, %v1338_v19 }
 0x796   : > { %v1340_v21 = vadd.f32 1e-05, %v1339_v20 }
 0x798   : > { %1973 = vrsqrt.f32 %v1340_v21 }
 0x7a5   : > { %v1974_v22 = vpop.eup %1973 }
 0x7a6   : > { %v1342_v23 = vmul.f32 %v1974_v22, %v1332_v59 }
 0x7a8   : > { %v1349_v24 = vmul.f32 %v1732_v11, %v1342_v23 }
 0x7aa   : > { %v1350_v25 = vpack.c.bf16 %v1349_v24, %v1349_v24 }
 0x7ac   : > { %1352 = vst.msk [vmem:[#allocation5] sm:$0xf] %vm1351_vm2, %v1350_v25 }
 0x7b3   : > { %v1353_v26 = vld [vmem:[#allocation5] sm:$0xf] }
 0x7b4   : > { %1879 = vmatmul.mubr.msk.bf16.vlgmr.msra.gmra.mxu1 %vm490_vm0, %v1353_v26  ;;  %1891 = vmatmul.mubr.msk.bf16.vlgmr.msra.gmra.mxu0 %vm490_vm0, %v1353_v26 }
 0x7b5   : > { %1898 = vmatprep.mubr.msk.bf16.mxu1 %vm2004_vm1, %v2003_v5  ;;  %1895 = vmatpush3.bf16.xpose.msra.mxu1 %v1550_v28 }
 0x7b6   : > { %1896 = vmatprep.subr.bf16.mxu1 %v2003_v5 }
 0x7bd   : > { %1897 = vmatpush3.bf16.xpose.msra.mxu1 %v1547_v30 }
 0x874   : > { %v1432_v31 = vpop.f32.mrf.mxu1  ;;  %v1512_v32 = vpop.f32.mrf.mxu0 }
 0x875   : > { %v1743_v33 = vmul.f32 -1.442695, %v1432_v31 }
 0x876   : > { %v1880_v34 = vpop.f32.mrf.mxu1  ;;  %v1892_v35 = vpop.f32.mrf.mxu0 }
 0x877   : > { %1975 = vpow2.f32 %v1743_v33 }
 0x878   : > { %v1435_v36 = vpop.f32.mrf.mxu1  ;;  %v1515_v37 = vpop.f32.mrf.mxu0 }
 0x87a   : > { %v1881_v38 = vpop.f32.mrf.mxu1  ;;  %v1893_v39 = vpop.f32.mrf.mxu0 }
 0x884   : > { %v1976_v5 = vpop.eup %1975 }
 0x885   : > { %v1521_v40 = vadd.f32 1.0, %v1976_v5 }
 0x887   : > { %1977 = vrcp.f32 %v1521_v40 }
 0x894   : > { %v1978_v41 = vpop.eup %1977 }
 0x895   : > { %v1524_v42 = vmul.f32 %v1978_v41, %v1432_v31 }
 0x897   : > { %v1525_v43 = vmul.f32 %v1524_v42, %v1512_v32 }
 0x899   : > { %v1526_v44 = vpack.c.bf16 %v1525_v43, %v1525_v43 }
 0x89b   : > { %1899 = vmatmul.mubr.msk.bf16.vlgmr.msra.gmra.mxu1 %vm1542_vm3, %v1526_v44 }
 0x95b   : > { %v1586_v46 = vpop.f32.mrf.mxu1 }
 0x95c   : > { %v1592_v47 = vadd.f32 %v1586_v46, %v1527_v45 }
 0x95d   : > { %v1900_v48 = vpop.f32.mrf.mxu1 }
 0x95e   : > { %1593 = vst.msk [vmem:[%s2289_s17] sm:$0xff] %vm490_vm0, %v1592_v47 }
 0x95f   : > { %v1589_v49 = vpop.f32.mrf.mxu1 }
 0x961   : > { %v1901_v50 = vpop.f32.mrf.mxu1 }
 0x962 PF: > { %s22_s23 = sadd.s32 1, %s2001_s23   ;;  %s2376_s21 = smov %s1997_s22 }
 0x963   : > { %p19_p5 = scmp.ge.s32.totalorder %s22_s23, 4   ;;  %s2377_s22 = smov %s2379_s24 }
 0x965   :  { %21 = sbr.rel (!%p19_p5) target bundleno = 2 (0x2), region = 111 }

</bundles_post_ra>
